<compile_context>
chip_gen: v5e
topology: v5e:2x2
jax: 0.10.0
libtpu: 0.0.40
codegen_flags: <defaults>
</compile_context>

<pallas_src>
import functools
import math

import jax
import jax.numpy as jnp
import numpy as np
from jax.experimental import pallas as pl
from jax.experimental.pallas import tpu as pltpu


def _round_up(x, m):
    return (x + m - 1) // m * m


def _attn_kernel(*refs, apply_mask: bool, emit_attn: bool, approx_recip: bool):
    """Fused self-attention over a (Bt, S, F) block of batch elements.

    refs order: x, [mask], w_qkv, b_qkv, out, [attn]
    """
    it = iter(refs)
    x_ref = next(it)
    mask_ref = next(it) if apply_mask else None
    w_ref = next(it)
    b_ref = next(it)
    out_ref = next(it)
    attn_ref = next(it) if emit_attn else None

    Bt, S, F = x_ref.shape
    Fp = w_ref.shape[1] // 3        # per-projection width, padded to 128 lanes
    mm_dtype = w_ref.dtype          # matmul input dtype (f32, or bf16)

    # ---- Fused QKV projection: one (Bt*S, F) x (F, 3*Fp) MXU matmul. ----
    # Weights were pre-transposed & concatenated [K|Q|V] by the wrapper, so no
    # in-kernel transposes are needed anywhere.
    x2d = x_ref[...].reshape(Bt * S, F).astype(mm_dtype)
    qkv = jnp.dot(x2d, w_ref[...], preferred_element_type=jnp.float32)
    qkv = (qkv + b_ref[...]).reshape(Bt, S, 3 * Fp)   # bias + rest in f32

    # 128-aligned slices (Fp % 128 == 0): no cross-lane relayout copies.
    k = qkv[:, :, 0 * Fp:1 * Fp]
    q = qkv[:, :, 1 * Fp:2 * Fp]
    v = qkv[:, :, 2 * Fp:3 * Fp]

    # Scale Q (S*Fp elements) instead of scores (S*S elements).
    q = q * jnp.float32(1.0 / math.sqrt(F))

    # scores = Q @ K^T, contracting the (padded) feature dim directly; the
    # zero-padded columns contribute exactly 0, so the result is unchanged.
    scores = jnp.einsum("bqd,bkd->bqk", q.astype(mm_dtype), k.astype(mm_dtype),
                        preferred_element_type=jnp.float32)   # (Bt, S, S)

    if apply_mask:
        # Exact PyTorch masked_fill(mask == 0, -1e9) semantics on the raw mask.
        # (Fully-masked rows degrade to uniform attention, same as reference.)
        scores = jnp.where(mask_ref[...] == 0, jnp.float32(-1e9), scores)

    # Numerically-stable softmax, kept in f32 (v5e has no bf16 VPU/EUP path).
    m = jnp.max(scores, axis=-1, keepdims=True)
    e = jnp.exp(scores - m)
    denom = jnp.sum(e, axis=-1, keepdims=True)
    attn = e * pl.reciprocal(denom, approx=approx_recip)

    out = jnp.einsum("bqk,bkd->bqd", attn.astype(mm_dtype), v.astype(mm_dtype),
                     preferred_element_type=jnp.float32)   # (Bt, S, Fp)

    # Lane-dense flattened stores (wrapper reshapes back): drop the feature
    # padding and write full-width slabs -> unmasked vst instead of vst.msk.
    out_ref[...] = out[:, :, :F].reshape(Bt, 1, S * F).astype(out_ref.dtype)
    if emit_attn:
        attn_ref[...] = attn.reshape(Bt, 1, S * S).astype(attn_ref.dtype)


def _vmem_plan():
    """(block-sizing budget, scoped vmem limit, min grid steps) per chip gen."""
    cap = 128 * 1024 * 1024
    try:
        cap = int(getattr(pltpu.get_tpu_info(), "vmem_capacity_bytes", cap))
    except Exception:
        pass
    if cap <= 64 * 1024 * 1024:
        # v7x-class: 64 MiB VMEM per TensorCore, 2 TCs/chip.  Keep the
        # per-step working set ~40 MiB and give both cores a grid step.
        return 40 * 1024 * 1024, 48 * 1024 * 1024, 2
    # v5e / v6e: 128 MiB VMEM, single TensorCore; big tiles, grid=(1,) is fine.
    return 80 * 1024 * 1024, 96 * 1024 * 1024, 1


def _bytes_per_batch_elem(S, F, Fp, mm_bytes, mask_bytes, attn_bytes,
                          apply_mask, emit_attn):
    """Rough VMEM bytes per batch element per grid step (blocks + scratch)."""
    b = 2 * S * F * 4                  # x block (double-buffered)
    b += 2 * S * F * 4                 # out block (flattened; same bytes)
    if apply_mask:
        b += 2 * S * S * mask_bytes    # mask block
    if emit_attn:
        b += 2 * S * S * attn_bytes    # attn block
    # In-kernel temporaries (compiler scratch, single-buffered):
    b += S * F * mm_bytes              # x cast for the MXU
    b += S * 3 * Fp * 4                # fused qkv (f32)
    b += 3 * S * Fp * (4 + mm_bytes)   # k/q/v + their MXU casts
    b += 4 * S * S * 4                 # scores / masked / exp / attn chain
    b += 2 * S * Fp * 4                # attn@v (padded) + flattened store copy
    return b


def _pick_block_batch(batch, cap):
    """Largest divisor of `batch` that is <= cap (>= 1)."""
    bt = max(1, min(cap, batch))
    while batch % bt:
        bt -= 1
    return bt


def self_attention_forward(x, params, mask=None, *,
                           return_attention=True,
                           attention_dtype=jnp.float32,
                           matmul_dtype=jnp.float32,
                           approx_softmax_reciprocal=False,
                           block_batch=None):
    """Pallas forward for SelfAttentionLayer.

    x: (B, S, F) float32.  params = (Wk, bk, Wq, bq, Wv, bv) in PyTorch
    nn.Linear layout (W is (out_features, in_features); y = x @ W.T + b).
    mask: optional (B, S, S); positions where mask == 0 get -1e9 before softmax.

    matmul_dtype: jnp.bfloat16 runs the matmuls on the MXU in bf16 with f32
      accumulation on ANY generation (v5e's MXU is bf16-native too); softmax /
      bias / mask math always stays f32.  With bf16 the returned attention
      weights only match an f32 reference to ~1e-1.
    return_attention / attention_dtype: the attention-weights writeback is pure
      B*S^2 HBM traffic; disable it or emit bf16 for production paths.
    block_batch: batch elements per grid step; None = VMEM-budgeted auto
      (generation-aware: smaller on v7x, grid kept >= 2 steps there).
    """
    B, S, F = x.shape
    wk, bk, wq, bq, wv, bv = params

    # Pre-transpose + fuse the projection weights, zero-padding each block's
    # output columns to Fp = round_up(F, 128) so in-kernel K/Q/V slices are
    # 128-lane aligned.  Order: [K | Q | V].
    Fp = _round_up(F, 128)
    pad_w = lambda w: jnp.pad(w.T, ((0, 0), (0, Fp - F)))
    pad_b = lambda b: jnp.pad(b, (0, Fp - F))
    w_qkv = jnp.concatenate([pad_w(wk), pad_w(wq), pad_w(wv)],
                            axis=1).astype(matmul_dtype)
    b_qkv = jnp.concatenate([pad_b(bk), pad_b(bq), pad_b(bv)]
                            ).reshape(1, 3 * Fp).astype(jnp.float32)

    apply_mask = mask is not None
    if apply_mask and jnp.issubdtype(mask.dtype, jnp.bool_):
        mask = mask.astype(jnp.int8)   # 1-byte DMA flags; `== 0` stays exact
    mask_bytes = mask.dtype.itemsize if apply_mask else 0
    attn_bytes = jnp.dtype(attention_dtype).itemsize
    mm_bytes = jnp.dtype(matmul_dtype).itemsize

    # ---- Generation-aware, VMEM-budgeted block_batch / grid. ----
    budget, vmem_limit, min_steps = _vmem_plan()
    if block_batch is None:
        fixed = 2 * (F * 3 * Fp * mm_bytes + 3 * Fp * 4)   # weights + bias
        per = _bytes_per_batch_elem(S, F, Fp, mm_bytes, mask_bytes, attn_bytes,
                                    apply_mask, return_attention)
        cap = max(1, (budget - fixed) // per)
        cap = min(cap, max(1, B // min_steps))   # keep >= min_steps grid steps
        bt = _pick_block_batch(B, cap)
    else:
        bt = _pick_block_batch(B, block_batch)
    grid = (B // bt,)

    operands = [x]
    in_specs = [pl.BlockSpec((bt, S, F), lambda b: (b, 0, 0))]
    if apply_mask:
        operands.append(mask)
        in_specs.append(pl.BlockSpec((bt, S, S), lambda b: (b, 0, 0)))
    operands += [w_qkv, b_qkv]
    # NOTE: w_qkv / b_qkv have grid-invariant index maps; at very large F their
    # double-buffer could be collapsed with pipeline_mode=pl.Buffered(1).
    in_specs += [
        pl.BlockSpec((F, 3 * Fp), lambda b: (0, 0)),
        pl.BlockSpec((1, 3 * Fp), lambda b: (0, 0)),
    ]

    # Lane-dense flattened output layouts (reshaped back below).
    out_shape = [jax.ShapeDtypeStruct((B, 1, S * F), jnp.float32)]
    out_specs = [pl.BlockSpec((bt, 1, S * F), lambda b: (b, 0, 0))]
    if return_attention:
        out_shape.append(jax.ShapeDtypeStruct((B, 1, S * S), attention_dtype))
        out_specs.append(pl.BlockSpec((bt, 1, S * S), lambda b: (b, 0, 0)))

    kernel = functools.partial(
        _attn_kernel, apply_mask=apply_mask, emit_attn=return_attention,
        approx_recip=approx_softmax_reciprocal)

    result = pl.pallas_call(
        kernel,
        grid_spec=pltpu.PrefetchScalarGridSpec(
            num_scalar_prefetch=0,
            grid=grid,
            in_specs=in_specs,
            out_specs=out_specs,
        ),
        out_shape=tuple(out_shape),
        compiler_params=pltpu.CompilerParams(
            dimension_semantics=("parallel",),
            vmem_limit_bytes=vmem_limit),
    )(*operands)

    out = result[0].reshape(B, S, F)
    if return_attention:
        return out, result[1].reshape(B, S, S)
    return out


def _reference(x, params, mask=None):
    wk, bk, wq, bq, wv, bv = params
    keys = x @ wk.T + bk
    queries = x @ wq.T + bq
    values = x @ wv.T + bv
    F = x.shape[-1]
    scores = jnp.einsum("bqd,bkd->bqk", queries, keys) / jnp.sqrt(jnp.float32(F))
    if mask is not None:
        scores = jnp.where(mask == 0, jnp.float32(-1e9), scores)
    attn = jax.nn.softmax(scores, axis=-1)
    out = jnp.einsum("bqk,bkd->bqd", attn, values)
    return out, attn


if __name__ == "__main__":
    B, S, F = 8, 8, 32
    key = jax.random.PRNGKey(0)
    kx, kwk, kbk, kwq, kbq, kwv, kbv = jax.random.split(key, 7)

    x = jax.random.normal(kx, (B, S, F), dtype=jnp.float32)

    # Deterministic parameter init (nn.Linear shapes: W (F, F), b (F,)).
    bound = 1.0 / np.sqrt(F)
    params = (
        jax.random.uniform(kwk, (F, F), jnp.float32, -bound, bound),
        jax.random.uniform(kbk, (F,), jnp.float32, -bound, bound),
        jax.random.uniform(kwq, (F, F), jnp.float32, -bound, bound),
        jax.random.uniform(kbq, (F,), jnp.float32, -bound, bound),
        jax.random.uniform(kwv, (F, F), jnp.float32, -bound, bound),
        jax.random.uniform(kbv, (F,), jnp.float32, -bound, bound),
    )

    # Causal mask exercises the masked_fill path (raw mask, no wrapper pass).
    mask = jnp.tril(jnp.ones((S, S), dtype=jnp.float32))[None].repeat(B, axis=0)

    # f32 path, with mask, returning attention weights (PyTorch forward parity).
    out, attn = self_attention_forward(x, params, mask)
    jax.block_until_ready((out, attn))
    ref_out, ref_attn = _reference(x, params, mask)
    np.testing.assert_allclose(np.asarray(out), np.asarray(ref_out),
                               rtol=1e-5, atol=1e-5)
    np.testing.assert_allclose(np.asarray(attn), np.asarray(ref_attn),
                               rtol=1e-5, atol=1e-5)

    # No-mask / no-attention-output path (skips mask DMA and attn writeback).
    out_nm = self_attention_forward(x, params, mask=None, return_attention=False)
    jax.block_until_ready(out_nm)
    ref_out_nm, _ = _reference(x, params, None)
    np.testing.assert_allclose(np.asarray(out_nm), np.asarray(ref_out_nm),
                               rtol=1e-5, atol=1e-5)

    # bf16-MXU path (supported on all generations); f32 accumulation, loose check.
    out_bf, attn_bf = self_attention_forward(x, params, mask,
                                             matmul_dtype=jnp.bfloat16)
    jax.block_until_ready((out_bf, attn_bf))
    np.testing.assert_allclose(np.asarray(out_bf), np.asarray(ref_out),
                               rtol=0.1, atol=0.1)

    print("KERNEL_OK")
</pallas_src>

<mosaic_0001>
module attributes {stable_mosaic.version = 11 : i64} {
  func.func @_attn_kernel(%arg0: i32, %arg1: memref<8x8x32xf32, #tpu.memory_space<vmem>>, %arg2: memref<8x8x8xf32, #tpu.memory_space<vmem>>, %arg3: memref<32x384xf32, #tpu.memory_space<vmem>>, %arg4: memref<1x384xf32, #tpu.memory_space<vmem>>, %arg5: memref<8x1x256xf32, #tpu.memory_space<vmem>>, %arg6: memref<8x1x64xf32, #tpu.memory_space<vmem>>) attributes {dimension_semantics = [#tpu.dimension_semantics<parallel>], iteration_bounds = array<i64: 1>, scalar_prefetch = 0 : i64, scratch_operands = 0 : i64, tpu.core_type = #tpu.core_type<tc>, window_params = [{transform_indices = @transform_0, window_bounds = array<i64: 8, 8, 32>}, {transform_indices = @transform_1, window_bounds = array<i64: 8, 8, 8>}, {pipeline_mode = #tpu.pipeline_mode<synchronous>, transform_indices = @transform_2, window_bounds = array<i64: 32, 384>}, {pipeline_mode = #tpu.pipeline_mode<synchronous>, transform_indices = @transform_3, window_bounds = array<i64: 1, 384>}, {transform_indices = @transform_4, window_bounds = array<i64: 8, 1, 256>}, {transform_indices = @transform_5, window_bounds = array<i64: 8, 1, 64>}]} {
    %c0 = arith.constant 0 : index
    %c0_0 = arith.constant 0 : index
    %c0_1 = arith.constant 0 : index
    %0 = vector.load %arg1[%c0, %c0_0, %c0_1] : memref<8x8x32xf32, #tpu.memory_space<vmem>>, vector<8x8x32xf32>
    %1 = vector.shape_cast %0 : vector<8x8x32xf32> to vector<64x32xf32>
    %c0_2 = arith.constant 0 : index
    %c0_3 = arith.constant 0 : index
    %2 = vector.load %arg3[%c0_2, %c0_3] : memref<32x384xf32, #tpu.memory_space<vmem>>, vector<32x384xf32>
    %cst = arith.constant dense<0.000000e+00> : vector<64x384xf32>
    %3 = tpu.matmul %1, %2, %cst {dimension_numbers = #tpu.dot_dimension_numbers<[1], [0], [0], [1], [0, 0, 1, 1], [], []>} : vector<64x32xf32>, vector<32x384xf32>, vector<64x384xf32> -> vector<64x384xf32>
    %c0_4 = arith.constant 0 : index
    %c0_5 = arith.constant 0 : index
    %4 = vector.load %arg4[%c0_4, %c0_5] : memref<1x384xf32, #tpu.memory_space<vmem>>, vector<1x384xf32>
    %5 = vector.broadcast %4 : vector<1x384xf32> to vector<64x384xf32>
    %6 = arith.addf %3, %5 : vector<64x384xf32>
    %7 = vector.shape_cast %6 : vector<64x384xf32> to vector<8x8x384xf32>
    %8 = vector.extract_strided_slice %7 {offsets = [0, 0, 0], sizes = [8, 8, 128], strides = [1, 1, 1]} : vector<8x8x384xf32> to vector<8x8x128xf32>
    %9 = vector.extract_strided_slice %7 {offsets = [0, 0, 128], sizes = [8, 8, 128], strides = [1, 1, 1]} : vector<8x8x384xf32> to vector<8x8x128xf32>
    %10 = vector.extract_strided_slice %7 {offsets = [0, 0, 256], sizes = [8, 8, 128], strides = [1, 1, 1]} : vector<8x8x384xf32> to vector<8x8x128xf32>
    %cst_6 = arith.constant 0.176776692 : f32
    %11 = vector.broadcast %cst_6 : f32 to vector<8x8x128xf32>
    %12 = arith.mulf %9, %11 : vector<8x8x128xf32>
    "tpu.trace_start"() <{level = 10 : i32, message = "bqd,bkd->bqk"}> : () -> ()
    %cst_7 = arith.constant dense<0.000000e+00> : vector<8x8x8xf32>
    %13 = tpu.matmul %12, %8, %cst_7 {dimension_numbers = #tpu.dot_dimension_numbers<[2], [2], [1], [1], [0, 0, 0, 1, 1, 1], [0], [0]>} : vector<8x8x128xf32>, vector<8x8x128xf32>, vector<8x8x8xf32> -> vector<8x8x8xf32>
    "tpu.trace_stop"() : () -> ()
    %c0_8 = arith.constant 0 : index
    %c0_9 = arith.constant 0 : index
    %c0_10 = arith.constant 0 : index
    %14 = vector.load %arg2[%c0_8, %c0_9, %c0_10] : memref<8x8x8xf32, #tpu.memory_space<vmem>>, vector<8x8x8xf32>
    %cst_11 = arith.constant 0.000000e+00 : f32
    %15 = vector.broadcast %cst_11 : f32 to vector<8x8x8xf32>
    %16 = arith.cmpf oeq, %14, %15 : vector<8x8x8xf32>
    %cst_12 = arith.constant -1.000000e+09 : f32
    %17 = vector.broadcast %cst_12 : f32 to vector<8x8x8xf32>
    %18 = arith.select %16, %17, %13 : vector<8x8x8xi1>, vector<8x8x8xf32>
    %cst_13 = arith.constant dense<0xFF800000> : vector<8x8xf32>
    %19 = vector.multi_reduction <maximumf>, %18, %cst_13 [2] : vector<8x8x8xf32> to vector<8x8xf32>
    %20 = vector.shape_cast %19 : vector<8x8xf32> to vector<8x8x1xf32>
    %21 = vector.broadcast %20 : vector<8x8x1xf32> to vector<8x8x8xf32>
    %22 = arith.subf %18, %21 : vector<8x8x8xf32>
    %23 = math.exp %22 : vector<8x8x8xf32>
    %cst_14 = arith.constant dense<0.000000e+00> : vector<8x8xf32>
    %24 = vector.multi_reduction <add>, %23, %cst_14 [2] : vector<8x8x8xf32> to vector<8x8xf32>
    %25 = vector.shape_cast %24 : vector<8x8xf32> to vector<8x8x1xf32>
    %26 = tpu.reciprocal %25 : vector<8x8x1xf32> -> vector<8x8x1xf32>
    %27 = vector.broadcast %26 : vector<8x8x1xf32> to vector<8x8x8xf32>
    %28 = arith.mulf %23, %27 : vector<8x8x8xf32>
    "tpu.trace_start"() <{level = 10 : i32, message = "bqk,bkd->bqd"}> : () -> ()
    %cst_15 = arith.constant dense<0.000000e+00> : vector<8x8x128xf32>
    %29 = tpu.matmul %28, %10, %cst_15 {dimension_numbers = #tpu.dot_dimension_numbers<[2], [1], [1], [2], [0, 0, 0, 1, 1, 2], [0], [0]>} : vector<8x8x8xf32>, vector<8x8x128xf32>, vector<8x8x128xf32> -> vector<8x8x128xf32>
    "tpu.trace_stop"() : () -> ()
    %30 = vector.extract_strided_slice %29 {offsets = [0, 0, 0], sizes = [8, 8, 32], strides = [1, 1, 1]} : vector<8x8x128xf32> to vector<8x8x32xf32>
    %31 = vector.shape_cast %30 : vector<8x8x32xf32> to vector<8x1x256xf32>
    %c0_16 = arith.constant 0 : index
    %c0_17 = arith.constant 0 : index
    %c0_18 = arith.constant 0 : index
    %32 = vector.load %arg5[%c0_16, %c0_17, %c0_18] : memref<8x1x256xf32, #tpu.memory_space<vmem>>, vector<8x1x256xf32>
    tpu.vector_store %arg5[%c0_16, %c0_17, %c0_18], %31 {strides = array<i32>} : memref<8x1x256xf32, #tpu.memory_space<vmem>>, vector<8x1x256xf32>,
    %33 = vector.shape_cast %28 : vector<8x8x8xf32> to vector<8x1x64xf32>
    %c0_19 = arith.constant 0 : index
    %c0_20 = arith.constant 0 : index
    %c0_21 = arith.constant 0 : index
    %34 = vector.load %arg6[%c0_19, %c0_20, %c0_21] : memref<8x1x64xf32, #tpu.memory_space<vmem>>, vector<8x1x64xf32>
    tpu.vector_store %arg6[%c0_19, %c0_20, %c0_21], %33 {strides = array<i32>} : memref<8x1x64xf32, #tpu.memory_space<vmem>>, vector<8x1x64xf32>,
    return
  }
  func.func @transform_0(%arg0: i32) -> (i32, i32, i32) {
    %c0_i32 = arith.constant 0 : i32
    %c0_i32_0 = arith.constant 0 : i32
    %c0_i32_1 = arith.constant 0 : i32
    return %arg0, %c0_i32, %c0_i32_0 : i32, i32, i32
  }
  func.func @transform_1(%arg0: i32) -> (i32, i32, i32) {
    %c0_i32 = arith.constant 0 : i32
    %c0_i32_0 = arith.constant 0 : i32
    %c0_i32_1 = arith.constant 0 : i32
    return %arg0, %c0_i32, %c0_i32_0 : i32, i32, i32
  }
  func.func @transform_2(%arg0: i32) -> (i32, i32) {
    %c0_i32 = arith.constant 0 : i32
    %c0_i32_0 = arith.constant 0 : i32
    %c0_i32_1 = arith.constant 0 : i32
    return %c0_i32, %c0_i32_0 : i32, i32
  }
  func.func @transform_3(%arg0: i32) -> (i32, i32) {
    %c0_i32 = arith.constant 0 : i32
    %c0_i32_0 = arith.constant 0 : i32
    %c0_i32_1 = arith.constant 0 : i32
    return %c0_i32, %c0_i32_0 : i32, i32
  }
  func.func @transform_4(%arg0: i32) -> (i32, i32, i32) {
    %c0_i32 = arith.constant 0 : i32
    %c0_i32_0 = arith.constant 0 : i32
    %c0_i32_1 = arith.constant 0 : i32
    return %arg0, %c0_i32, %c0_i32_0 : i32, i32, i32
  }
  func.func @transform_5(%arg0: i32) -> (i32, i32, i32) {
    %c0_i32 = arith.constant 0 : i32
    %c0_i32_0 = arith.constant 0 : i32
    %c0_i32_1 = arith.constant 0 : i32
    return %arg0, %c0_i32, %c0_i32_0 : i32, i32, i32
  }
}

</mosaic_0001>

<bundles_post_ra>
// kernel: tpu_custom_call.1
= control target key start
LH: loop header
LB: loop body
LE: loop exit
PB: predicated region body
PF: predicated region fallthrough
CT: control target
= control target key end

     0   :  { %11 = vsyncpa [#allocation3], 0  ;;  %s3216_s0 = inlined_call_operand.hbm [shape: f32[8,8,32], index: 0, kind: input, shape index: {}]   ;;  %s3217_s1 = inlined_call_operand.hbm [shape: f32[8,8,8], index: 1, kind: input, shape index: {}]   ;;  %s3218_s2 = inlined_call_operand.hbm [shape: f32[32,384], index: 2, kind: input, shape index: {}]   ;;  %s3219_s3 = inlined_call_operand.hbm [shape: f32[1,384], index: 3, kind: input, shape index: {}]   ;;  %s3220_s4 = inlined_call_operand.hbm [shape: f32[8,1,256], index: 4, kind: output, shape index: {0}]   ;;  %s3221_s5 = inlined_call_operand.hbm [shape: f32[8,1,64], index: 5, kind: output, shape index: {1}]  }
   0x1   :  { %12 = vsyncpa [#allocation6], 0 }
   0x2   :  { %13 = vsyncpa [#allocation9], 0 }
   0x3   :  { %14 = vsyncpa [#allocation4], 0 }
   0x4   :  { %15 = vsyncpa [#allocation12], 0  ;;  %s33_s20 = sshll.u32 %s3217_s1, 4  ;;  %s2303_s21 = smov [#allocation5]   ;;  %s34_s20 = int_to_ptr.hbm [resolvable:$true] %s33_s20 }
   0x5   :  { %s35_s22 = sshll.u32 %s2303_s21, 4  ;;  %s20_s25 = sshll.u32 %s3216_s0, 4  ;;  %s36_s22 = int_to_ptr.vmem [resolvable:$true] %s35_s22  ;;  %s21_s25 = int_to_ptr.hbm [resolvable:$true] %s20_s25 }
   0x6   :  { %s2304_s26 = smov 128   ;;  %s2305_s27 = smov 8  }
   0x7   :  { %41 = dma.hbm_to_vmem [thread:$0]  %s34_s20, 1024, %s36_s22, [#allocation6], %s2304_s26, %s2304_s26, %s2305_s27  }
   0x8   :  { %s2306_s28 = smov [#allocation2]   ;;  %s46_s7 = sshll.u32 %s3218_s2, 4  ;;  %s47_s7 = int_to_ptr.hbm [resolvable:$true] %s46_s7 }
   0x9   :  { %s22_s29 = sshll.u32 %s2306_s28, 4  ;;  %s2307_s1 = smov [#allocation7]   ;;  %s23_s29 = int_to_ptr.vmem [resolvable:$true] %s22_s29 }
   0xa   :  { %28 = dma.hbm_to_vmem [thread:$0]  %s21_s25, 1024, %s23_s29, [#allocation3], %s2304_s26, %s2304_s26, %s2305_s27  }
   0xb   :  { %s48_s8 = sshll.u32 %s2307_s1, 4  ;;  %s60_s10 = sshll.u32 %s3219_s3, 4  ;;  %s49_s8 = int_to_ptr.vmem [resolvable:$true] %s48_s8  ;;  %s61_s10 = int_to_ptr.hbm [resolvable:$true] %s60_s10 }
   0xc   :  { %s2308_s11 = smov 384   ;;  %s2309_s12 = smov 24  }
   0xd   :  { %54 = dma.hbm_to_vmem [thread:$0]  %s47_s7, 1536, %s49_s8, [#allocation6], %s2308_s11, %s2308_s11, %s2309_s12  }
   0xe   :  { %s2310_s13 = smov [#allocation8]  }
   0xf   :  { %s62_s14 = sshll.u32 %s2310_s13, 4  ;;  %s63_s14 = int_to_ptr.vmem [resolvable:$true] %s62_s14 }
  0x10   :  { %65 = dma.hbm_to_vmem [thread:$0]  %s61_s10, 48, %s63_s14, [#allocation9]  }
  0x11   :  { %2293 = dma.done.wait [#allocation3], 1024  }
  0x12   :  { %2294 = vsyncadd [#allocation3], 4294966272 }
  0x13   :  { %2295 = dma.done.wait [#allocation6], 2560  }
  0x14   :  { %2296 = vsyncadd [#allocation6], 4294964736 }
  0x15   :  { %2297 = dma.done.wait [#allocation9], 48  }
  0x16   :  { %2298 = vsyncadd [#allocation9], 4294967248  ;;  %v99_v0 = vld [vmem:[#allocation7 + $0x48] sm:$0xff]  ;;  %v100_v1 = vld [vmem:[#allocation7 + $0x50] sm:$0xff]  ;;  %vm110_vm0 = vcmask 261120   ;;  %vm450_vm2 = vcmask 64512  }
  0x17   :  { %v96_v2 = vld [vmem:[#allocation7 + $0x30] sm:$0xff]  ;;  %147 = vmatpush.msra.mxu0 %v99_v0  ;;  %188 = vmatpush.msra.mxu1 %v100_v1  ;;  %v97_v3 = vld [vmem:[#allocation7 + $0x38] sm:$0xff]  ;;  %v94_v5 = vld [vmem:[#allocation7 + $0x20] sm:$0xff]  ;;  %vm828_vm14 = vcmask 1047556   ;;  %s2313_s2 = smov 16   ;;  %s2314_s3 = smov 32  }
  0x18   :  { %v93_v4 = vld [vmem:[#allocation7 + $0x18] sm:$0xff]  ;;  %v90_v6 = vld [vmem:[#allocation7] sm:$0xff]  ;;  %v91_v7 = vld [vmem:[#allocation7 + $0x8] sm:$0xff]  ;;  %s2315_s15 = smov 40   ;;  %s2316_s16 = smov 48  }
  0x19   :  { %148 = vmatpush.msra.mxu0 %v96_v2  ;;  %189 = vmatpush.msra.mxu1 %v97_v3  ;;  %v2369_v8 = vld [vmem:[#allocation2] sm:$0xff]  ;;  %v2375_v9 = vld [vmem:[#allocation2 + $0x8] sm:$0xff]  ;;  %v2381_v10 = vld [vmem:[#allocation2 + $0x10] sm:$0xff]  ;;  %s2317_s17 = smov 56   ;;  %s2318_s18 = smov 64  }
  0x1a   :  { %v2387_v11 = vld [vmem:[#allocation2 + $0x18] sm:$0xff]  ;;  %v2393_v12 = vld [vmem:[#allocation2 + $0x20] sm:$0xff]  ;;  %v2399_v13 = vld [vmem:[#allocation2 + $0x28] sm:$0xff]  ;;  %s2319_s19 = smov 96   ;;  %s2031_s22 = sshll.u32 %s3220_s4, 4  ;;  %s2032_s22 = int_to_ptr.hbm [resolvable:$true] %s2031_s22 }
  0x1b   :  { %149 = vmatpush.msra.mxu0 %v93_v4  ;;  %190 = vmatpush.msra.mxu1 %v94_v5  ;;  %v2405_v14 = vld [vmem:[#allocation2 + $0x30] sm:$0xff]  ;;  %v2411_v15 = vld [vmem:[#allocation2 + $0x38] sm:$0xff]  ;;  %v2417_v16 = vld [vmem:[#allocation8] sm:$0x7]  ;;  %s2320_s23 = smov [#allocation10]   ;;  %s2321_s28 = smov [#allocation11]  }
  0x1c   :  { %v105_v17 = vperm.slane %v2417_v16, 1  ;;  %v104_v18 = vperm.slane %v2417_v16, 0  ;;  %v426_v59 = vld [vmem:[#allocation5] sm:$0xff]  ;;  %v427_v63 = vld [vmem:[#allocation5 + $0x8] sm:$0xff]  ;;  %v428_v3 = vld [vmem:[#allocation5 + $0x10] sm:$0xff]  ;;  %s2029_s24 = sshll.u32 %s2320_s23, 4  ;;  %s2030_s24 = int_to_ptr.vmem [resolvable:$true] %s2029_s24 }
  0x1d   :  { %150 = vmatpush.msra.mxu0 %v90_v6  ;;  %191 = vmatpush.msra.mxu1 %v91_v7  ;;  %vm434_vm1 = vcmp.eq.f32.partialorder %v426_v59, 0.0  ;;  %vm435_vm3 = vcmp.eq.f32.partialorder %v427_v63, 0.0  ;;  %vm436_vm4 = vcmp.eq.f32.partialorder %v428_v3, 0.0  ;;  %v429_v7 = vld [vmem:[#allocation5 + $0x18] sm:$0xff]  ;;  %s2042_s29 = sshll.u32 %s2321_s28, 4  ;;  %s2322_s4 = smov 2   ;;  %s2043_s29 = int_to_ptr.vmem [resolvable:$true] %s2042_s29 }
  0x1e   :  { %2064 = vmatmul.msk.f32.vlgmr.msra.gmra.mxu0 %vm110_vm0, %v2369_v8  ;;  %2072 = vmatmul.msk.f32.vlgmr.msra.gmra.mxu1 %vm110_vm0, %v2369_v8  ;;  %vm437_vm5 = vcmp.eq.f32.partialorder %v429_v7, 0.0 }
  0x26   :  { %2065 = vmatmul.msk.f32.gmra.mxu0 %vm110_vm0, %v2375_v9  ;;  %2073 = vmatmul.msk.f32.gmra.mxu1 %vm110_vm0, %v2375_v9 }
  0x2e   :  { %2066 = vmatmul.msk.f32.gmra.mxu0 %vm110_vm0, %v2381_v10  ;;  %2074 = vmatmul.msk.f32.gmra.mxu1 %vm110_vm0, %v2381_v10 }
  0x36   :  { %2067 = vmatmul.msk.f32.gmra.mxu0 %vm110_vm0, %v2387_v11  ;;  %2075 = vmatmul.msk.f32.gmra.mxu1 %vm110_vm0, %v2387_v11 }
  0x3e   :  { %2068 = vmatmul.msk.f32.gmra.mxu0 %vm110_vm0, %v2393_v12  ;;  %2076 = vmatmul.msk.f32.gmra.mxu1 %vm110_vm0, %v2393_v12 }
  0x46   :  { %2069 = vmatmul.msk.f32.gmra.mxu0 %vm110_vm0, %v2399_v13  ;;  %2077 = vmatmul.msk.f32.gmra.mxu1 %vm110_vm0, %v2399_v13 }
  0x4e   :  { %2070 = vmatmul.msk.f32.gmra.mxu0 %vm110_vm0, %v2405_v14  ;;  %2078 = vmatmul.msk.f32.gmra.mxu1 %vm110_vm0, %v2405_v14 }
  0x56   :  { %2071 = vmatmul.msk.f32.gmra.mxu0 %vm110_vm0, %v2411_v15  ;;  %2079 = vmatmul.msk.f32.gmra.mxu1 %vm110_vm0, %v2411_v15 }
  0x9b   :  { %v152_v19 = vpop.f32.mrf.mxu0  ;;  %v193_v20 = vpop.f32.mrf.mxu1 }
  0x9c   :  { %v194_v21 = vadd.f32 %v193_v20, %v105_v17  ;;  %v153_v22 = vadd.f32 %v152_v19, %v104_v18  ;;  %v430_v20 = vld [vmem:[#allocation5 + $0x20] sm:$0xff] }
  0x9d   :  { %vm438_vm6 = vcmp.eq.f32.partialorder %v430_v20, 0.0 }
  0x9e   :  { %v258_v23 = vmul.f32 0.17677669, %v194_v21  ;;  %281 = vmatpush.xpose.msra.mxu3 %v153_v22  ;;  %v101_v21 = vld [vmem:[#allocation7 + $0x58] sm:$0xff]  ;;  %v98_v22 = vld [vmem:[#allocation7 + $0x40] sm:$0xff] }
  0x9f   :  { %229 = vmatpush.msra.mxu2 %v101_v21 }
  0xa1   :  { %282 = vmatmul.f32.vlgmr.msra.gmra.mxu3 %v258_v23  ;;  %v95_v23 = vld [vmem:[#allocation7 + $0x28] sm:$0xff]  ;;  %230 = vmatpush.msra.mxu2 %v98_v22 }
  0xa3   :  { %v155_v24 = vpop.f32.mrf.mxu0  ;;  %v196_v25 = vpop.f32.mrf.mxu1  ;;  %231 = vmatpush.msra.mxu2 %v95_v23 }
  0xa4   :  { %v156_v26 = vadd.f32 %v155_v24, %v104_v18  ;;  %v197_v27 = vadd.f32 %v196_v25, %v105_v17  ;;  %v92_v24 = vld [vmem:[#allocation7 + $0x10] sm:$0xff] }
  0xa5   :  { %232 = vmatpush.msra.mxu2 %v92_v24 }
  0xa6   :  { %v259_v28 = vmul.f32 0.17677669, %v197_v27  ;;  %301 = vmatpush.xpose.msrb.mxu3 %v156_v26  ;;  %2080 = vmatmul.msk.f32.vlgmr.msra.gmra.mxu2 %vm110_vm0, %v2369_v8 }
  0xa9   :  { %302 = vmatmul.f32.vlgmr.msrb.gmra.mxu3 %v259_v28  ;;  %v431_v28 = vld [vmem:[#allocation5 + $0x28] sm:$0xff] }
  0xaa   :  { %vm439_vm7 = vcmp.eq.f32.partialorder %v431_v28, 0.0 }
  0xab   :  { %v158_v29 = vpop.f32.mrf.mxu0  ;;  %v199_v30 = vpop.f32.mrf.mxu1 }
  0xac   :  { %v159_v31 = vadd.f32 %v158_v29, %v104_v18  ;;  %v200_v32 = vadd.f32 %v199_v30, %v105_v17 }
  0xae   :  { %v260_v33 = vmul.f32 0.17677669, %v200_v32  ;;  %321 = vmatpush.xpose.msra.mxu3 %v159_v31  ;;  %v432_v32 = vld [vmem:[#allocation5 + $0x30] sm:$0xff]  ;;  %2081 = vmatmul.msk.f32.gmra.mxu2 %vm110_vm0, %v2375_v9 }
  0xaf   :  { %vm440_vm8 = vcmp.eq.f32.partialorder %v432_v32, 0.0 }
  0xb1   :  { %322 = vmatmul.f32.vlgmr.msra.gmra.mxu3 %v260_v33 }
  0xb3   :  { %v161_v34 = vpop.f32.mrf.mxu0  ;;  %v202_v35 = vpop.f32.mrf.mxu1 }
  0xb4   :  { %v162_v36 = vadd.f32 %v161_v34, %v104_v18  ;;  %v203_v37 = vadd.f32 %v202_v35, %v105_v17 }
  0xb6   :  { %v261_v38 = vmul.f32 0.17677669, %v203_v37  ;;  %341 = vmatpush.xpose.msrb.mxu3 %v162_v36  ;;  %v433_v36 = vld [vmem:[#allocation5 + $0x38] sm:$0xff]  ;;  %2082 = vmatmul.msk.f32.gmra.mxu2 %vm110_vm0, %v2381_v10 }
  0xb7   :  { %vm441_vm9 = vcmp.eq.f32.partialorder %v433_v36, 0.0  ;;  %v2312_v36 = vmov 1934713408  }
  0xb9   :  { %342 = vmatmul.f32.vlgmr.msrb.gmra.mxu3 %v261_v38 }
  0xbb   :  { %v164_v39 = vpop.f32.mrf.mxu0  ;;  %v205_v40 = vpop.f32.mrf.mxu1 }
  0xbc   :  { %v165_v41 = vadd.f32 %v164_v39, %v104_v18  ;;  %v206_v42 = vadd.f32 %v205_v40, %v105_v17 }
  0xbe   :  { %v262_v43 = vmul.f32 0.17677669, %v206_v42  ;;  %361 = vmatpush.xpose.msra.mxu3 %v165_v41  ;;  %2083 = vmatmul.msk.f32.gmra.mxu2 %vm110_vm0, %v2387_v11 }
  0xc1   :  { %362 = vmatmul.f32.vlgmr.msra.gmra.mxu3 %v262_v43 }
  0xc3   :  { %v167_v44 = vpop.f32.mrf.mxu0  ;;  %v208_v45 = vpop.f32.mrf.mxu1 }
  0xc4   :  { %v168_v46 = vadd.f32 %v167_v44, %v104_v18  ;;  %v209_v47 = vadd.f32 %v208_v45, %v105_v17 }
  0xc6   :  { %v263_v48 = vmul.f32 0.17677669, %v209_v47  ;;  %381 = vmatpush.xpose.msrb.mxu3 %v168_v46  ;;  %2084 = vmatmul.msk.f32.gmra.mxu2 %vm110_vm0, %v2393_v12 }
  0xc9   :  { %382 = vmatmul.f32.vlgmr.msrb.gmra.mxu3 %v263_v48 }
  0xcb   :  { %v170_v49 = vpop.f32.mrf.mxu0  ;;  %v211_v50 = vpop.f32.mrf.mxu1 }
  0xcc   :  { %v171_v51 = vadd.f32 %v170_v49, %v104_v18  ;;  %v212_v52 = vadd.f32 %v211_v50, %v105_v17 }
  0xce   :  { %v264_v53 = vmul.f32 0.17677669, %v212_v52  ;;  %401 = vmatpush.xpose.msra.mxu3 %v171_v51  ;;  %2085 = vmatmul.msk.f32.gmra.mxu2 %vm110_vm0, %v2399_v13 }
  0xd1   :  { %402 = vmatmul.f32.vlgmr.msra.gmra.mxu3 %v264_v53 }
  0xd3   :  { %v173_v54 = vpop.f32.mrf.mxu0  ;;  %v214_v55 = vpop.f32.mrf.mxu1 }
  0xd4   :  { %v174_v56 = vadd.f32 %v173_v54, %v104_v18  ;;  %v215_v57 = vadd.f32 %v214_v55, %v105_v17 }
  0xd6   :  { %v265_v58 = vmul.f32 0.17677669, %v215_v57  ;;  %421 = vmatpush.xpose.msrb.mxu3 %v174_v56  ;;  %2086 = vmatmul.msk.f32.gmra.mxu2 %vm110_vm0, %v2405_v14 }
  0xd9   :  { %422 = vmatmul.f32.vlgmr.msrb.gmra.mxu3 %v265_v58 }
  0xde   :  { %2087 = vmatmul.msk.f32.gmra.mxu2 %vm110_vm0, %v2411_v15 }
 0x124   :  { %v283_v60 = vpop.f32.mrf.mxu3 }
 0x125   :  { %v2421_v61 = vsel %vm434_vm1, -1e+09, %v283_v60  ;;  %v2481_v60 = vperm.slane %v2417_v16, 2 }
 0x126   :  { %v451_v62 = vsel %vm450_vm2, %v2421_v61, -inf }
 0x127   :  { %452 = vmax.xlane.f32.xlu0 %v451_v62 }
 0x129   :  { %v234_v62 = vpop.f32.mrf.mxu2 }
 0x12c   :  { %v303_v0 = vpop.f32.mrf.mxu3 }
 0x12d   :  { %v443_v1 = vsel %vm435_vm3, -1e+09, %v303_v0  ;;  %v235_v0 = vadd.f32 %v234_v62, %v2481_v60 }
 0x12e   :  { %v454_v2 = vsel %vm450_vm2, %v443_v1, -inf }
 0x12f   :  { %455 = vmax.xlane.f32.xlu0 %v454_v2  ;;  %661 = vmatpush.msra.mxu3 %v235_v0 }
 0x134   :  { %v323_v4 = vpop.f32.mrf.mxu3 }
 0x135   :  { %v2426_v5 = vsel %vm436_vm4, -1e+09, %v323_v4 }
 0x136   :  { %v457_v6 = vsel %vm450_vm2, %v2426_v5, -inf }
 0x137   :  { %458 = vmax.xlane.f32.xlu1 %v457_v6 }
 0x13c   :  { %v343_v17 = vpop.f32.mrf.mxu3 }
 0x13d   :  { %v2430_v18 = vsel %vm437_vm5, -1e+09, %v343_v17 }
 0x13e   :  { %v460_v19 = vsel %vm450_vm2, %v2430_v18, -inf }
 0x13f   :  { %461 = vmax.xlane.f32.xlu1 %v460_v19 }
 0x144   :  { %v363_v25 = vpop.f32.mrf.mxu3 }
 0x145   :  { %v446_v26 = vsel %vm438_vm6, -1e+09, %v363_v25 }
 0x146   :  { %v463_v27 = vsel %vm450_vm2, %v446_v26, -inf }
 0x147   :  { %464 = vmax.xlane.f32.xlu2 %v463_v27 }
 0x14c   :  { %v383_v29 = vpop.f32.mrf.mxu3 }
 0x14d   :  { %v447_v30 = vsel %vm439_vm7, -1e+09, %v383_v29 }
 0x14e   :  { %v466_v31 = vsel %vm450_vm2, %v447_v30, -inf }
 0x14f   :  { %467 = vmax.xlane.f32.xlu2 %v466_v31 }
 0x154   :  { %v403_v33 = vpop.f32.mrf.mxu3 }
 0x155   :  { %v448_v34 = vsel %vm440_vm8, -1e+09, %v403_v33  ;;  %v2311_v33 = vmov 1983009808  }
 0x156   :  { %v469_v35 = vsel %vm450_vm2, %v448_v34, -inf }
 0x157   :  { %470 = vmax.xlane.f32.xlu0 %v469_v35 }
 0x15c   :  { %v423_v8 = vpop.f32.mrf.mxu3 }
 0x15d   :  { %v2443_v37 = vsel %vm441_vm9, -1e+09, %v423_v8  ;;  %v841_v8 = vunpack.c.l.s4 %v2312_v36 }
 0x15e   :  { %v472_v38 = vsel %vm450_vm2, %v2443_v37, -inf }
 0x15f   :  { %473 = vmax.xlane.f32.xlu1 %v472_v38 }
 0x19a   :  { %v453_v9 = vpop.xlane.xlu0 %452 }
 0x19b   :  { %v475_v10 = vsub.f32 %v2421_v61, %v453_v9 }
 0x19d   :  { %v483_v39 = vmul.f32 1.442695, %v475_v10 }
 0x19f   :  { %2117 = vpow2.f32 %v483_v39 }
 0x1a2   :  { %v456_v40 = vpop.xlane.xlu0 %455 }
 0x1a3   :  { %v476_v41 = vsub.f32 %v443_v1, %v456_v40 }
 0x1a5   :  { %v2458_v11 = vpop.eup %2117  ;;  %v485_v42 = vmul.f32 1.442695, %v476_v41 }
 0x1a6   :  { %v499_v12 = vsel %vm450_vm2, %v2458_v11, 0.0 }
 0x1a7   :  { %2119 = vpow2.f32 %v485_v42  ;;  %500 = vadd.xlane.f32.xlu2 %v499_v12 }
 0x1aa   :  { %v459_v13 = vpop.xlane.xlu1 %458 }
 0x1ab   :  { %v477_v14 = vsub.f32 %v2426_v5, %v459_v13  ;;  %v237_v5 = vpop.f32.mrf.mxu2  ;;  %v2506_v13 = vunpack.c.0.s8 %v841_v8 }
 0x1ac   :  { %v238_v16 = vadd.f32 %v237_v5, %v2481_v60 }
 0x1ad   :  { %v2463_v43 = vpop.eup %2119  ;;  %v487_v15 = vmul.f32 1.442695, %v477_v14 }
 0x1ae   :  { %v502_v44 = vsel %vm450_vm2, %v2463_v43, 0.0  ;;  %684 = vmatpush.msrb.mxu0 %v238_v16 }
 0x1af   :  { %2121 = vpow2.f32 %v487_v15  ;;  %503 = vadd.xlane.f32.xlu0 %v502_v44 }
 0x1b2   :  { %v462_v45 = vpop.xlane.xlu1 %461 }
 0x1b3   :  { %v478_v46 = vsub.f32 %v2430_v18, %v462_v45  ;;  %v240_v21 = vpop.f32.mrf.mxu2 }
 0x1b4   :  { %v241_v22 = vadd.f32 %v240_v21, %v2481_v60 }
 0x1b5   :  { %v2468_v47 = vpop.eup %2121  ;;  %v489_v48 = vmul.f32 1.442695, %v478_v46 }
 0x1b6   :  { %v505_v49 = vsel %vm450_vm2, %v2468_v47, 0.0  ;;  %707 = vmatpush.msrb.mxu1 %v241_v22 }
 0x1b7   :  { %2123 = vpow2.f32 %v489_v48  ;;  %506 = vadd.xlane.f32.xlu1 %v505_v49 }
 0x1ba   :  { %v465_v50 = vpop.xlane.xlu2 %464 }
 0x1bb   :  { %v479_v51 = vsub.f32 %v446_v26, %v465_v50  ;;  %v243_v23 = vpop.f32.mrf.mxu2 }
 0x1bc   :  { %v244_v24 = vadd.f32 %v243_v23, %v2481_v60 }
 0x1bd   :  { %v2472_v52 = vpop.eup %2123  ;;  %v491_v53 = vmul.f32 1.442695, %v479_v51 }
 0x1be   :  { %v508_v54 = vsel %vm450_vm2, %v2472_v52, 0.0  ;;  %730 = vmatpush.msrb.mxu2 %v244_v24 }
 0x1bf   :  { %2125 = vpow2.f32 %v491_v53  ;;  %509 = vadd.xlane.f32.xlu2 %v508_v54 }
 0x1c2   :  { %v468_v55 = vpop.xlane.xlu2 %467 }
 0x1c3   :  { %v480_v56 = vsub.f32 %v447_v30, %v468_v55 }
 0x1c5   :  { %v2476_v57 = vpop.eup %2125  ;;  %v493_v58 = vmul.f32 1.442695, %v480_v56 }
 0x1c6   :  { %v511_v59 = vsel %vm450_vm2, %v2476_v57, 0.0 }
 0x1c7   :  { %2127 = vpow2.f32 %v493_v58  ;;  %512 = vadd.xlane.f32.xlu0 %v511_v59 }
 0x1ca   :  { %v471_v61 = vpop.xlane.xlu0 %470 }
 0x1cb   :  { %v481_v63 = vsub.f32 %v448_v34, %v471_v61  ;;  %v831_v34 = vunpack.c.l.s4 %v2311_v33 }
 0x1cd   :  { %v2484_v1 = vpop.eup %2127  ;;  %v495_v2 = vmul.f32 1.442695, %v481_v63  ;;  %v2502_v40 = vunpack.c.0.s8 %v831_v34 }
 0x1ce   :  { %v514_v3 = vsel %vm450_vm2, %v2484_v1, 0.0 }
 0x1cf   :  { %2129 = vpow2.f32 %v495_v2  ;;  %515 = vadd.xlane.f32.xlu1 %v514_v3 }
 0x1d2   :  { %v474_v4 = vpop.xlane.xlu1 %473 }
 0x1d3   :  { %v482_v6 = vsub.f32 %v2443_v37, %v474_v4 }
 0x1d5   :  { %v2490_v7 = vpop.eup %2129  ;;  %v497_v17 = vmul.f32 1.442695, %v482_v6 }
 0x1d6   :  { %v517_v18 = vsel %vm450_vm2, %v2490_v7, 0.0 }
 0x1d7   :  { %2131 = vpow2.f32 %v497_v17  ;;  %518 = vadd.xlane.f32.xlu2 %v517_v18 }
 0x1dd   :  { %v2494_v19 = vpop.eup %2131 }
 0x1de   :  { %v520_v20 = vsel %vm450_vm2, %v2494_v19, 0.0 }
 0x1df   :  { %521 = vadd.xlane.f32.xlu0 %v520_v20 }
 0x21a   :  { %v501_v25 = vpop.xlane.xlu2 %500 }
 0x21b   :  { %2133 = vrcp.f32 %v501_v25  ;;  %v534_v30 = vand.u32 2147483648, %v501_v25  ;;  %v532_v32 = vand.u32 2147483647, %v501_v25  ;;  %vm528_vm11 = vweird.f32 %v501_v25 }
 0x21d   :  { %v535_v38 = vor.u32 1.1754944e-38, %v534_v30  ;;  %vm533_vm13 = vcmp.eq.f32.partialorder %v532_v32, 8.507059e+37 }
 0x221   :  { %v2134_v26 = vpop.eup %2133 }
 0x222   :  { %v524_v27 = vmul.f32 %v2134_v26, %v501_v25  ;;  %v504_v28 = vpop.xlane.xlu0 %503  ;;  %vm529_vm10 = vweird.f32 %v2134_v26 }
 0x223   :  { %2135 = vrcp.f32 %v504_v28  ;;  %vm530_vm12 = vmor %vm528_vm11, %vm529_vm10  ;;  %v546_v45 = vand.u32 2147483647, %v504_v28  ;;  %v548_v46 = vand.u32 2147483648, %v504_v28  ;;  %vm542_vm1 = vweird.f32 %v504_v28 }
 0x224   :  { %v525_v29 = vsub.f32 1.0, %v524_v27 }
 0x225   :  { %vm547_vm4 = vcmp.eq.f32.partialorder %v546_v45, 8.507059e+37  ;;  %v549_v62 = vor.u32 1.1754944e-38, %v548_v46 }
 0x226   :  { %v526_v31 = vmul.f32 %v2134_v26, %v525_v29 }
 0x228   :  { %v527_v35 = vadd.f32 %v2134_v26, %v526_v31 }
 0x229   :  { %v2136_v37 = vpop.eup %2135 }
 0x22a   :  { %v531_v9 = vsel %vm530_vm12, %v2134_v26, %v527_v35  ;;  %v538_v10 = vmul.f32 %v2136_v37, %v504_v28  ;;  %v2500_v39 = vpop.xlane.xlu1 %506  ;;  %vm543_vm15 = vweird.f32 %v2136_v37 }
 0x22b   :  { %v536_v41 = vsel %vm533_vm13, %v535_v38, %v531_v9  ;;  %2137 = vrcp.f32 %v2500_v39  ;;  %vm544_vm3 = vmor %vm542_vm1, %vm543_vm15  ;;  %v562_v4 = vand.u32 2147483648, %v2500_v39  ;;  %v560_v21 = vand.u32 2147483647, %v2500_v39 }
 0x22c   :  { %v539_v42 = vsub.f32 1.0, %v538_v10  ;;  %v635_v12 = vmul.f32 %v2458_v11, %v536_v41  ;;  %v246_v11 = vpop.f32.mrf.mxu2  ;;  %vm556_vm6 = vweird.f32 %v2500_v39 }
 0x22d   :  { %v247_v55 = vadd.f32 %v246_v11, %v2481_v60  ;;  %v563_v26 = vor.u32 1.1754944e-38, %v562_v4  ;;  %vm561_vm8 = vcmp.eq.f32.partialorder %v560_v21, 8.507059e+37 }
 0x22e   :  { %v540_v14 = vmul.f32 %v2136_v37, %v539_v42  ;;  %2088 = vmatmul.msk.f32.vlgmr.msra.gmra.mxu3 %vm450_vm2, %v635_v12  ;;  %v1432_v15 = vperm.slane %v635_v12, %v2502_v40  ;;  %v1427_v44 = vrot.slane %v635_v12, 4 }
 0x22f   :  { %753 = vmatpush.msrb.mxu3 %v247_v55 }
 0x230   :  { %v541_v48 = vadd.f32 %v2136_v37, %v540_v14  ;;  %v2511_v49 = vperm.slane %v1432_v15, %v2506_v13  ;;  %v1437_v50 = vrot.slane %v1432_v15, 4  ;;  %v1428_v51 = vsel %vm828_vm14, 0.0, %v1427_v44 }
 0x231   :  { %v2138_v53 = vpop.eup %2137  ;;  %v1436_v54 = vperm.slane %v1428_v51, %v2502_v40 }
 0x232   :  { %v552_v56 = vmul.f32 %v2138_v53, %v2500_v39  ;;  %v2517_v58 = vpop.xlane.xlu2 %509  ;;  %v1457_v59 = vrot.slane %v2511_v49, 4  ;;  %v1438_v61 = vsel %vm828_vm14, 0.0, %v1437_v50  ;;  %v545_v3 = vsel %vm544_vm3, %v2136_v37, %v541_v48 }
 0x233   :  { %2139 = vrcp.f32 %v2517_v58  ;;  %v1446_v2 = vperm.slane %v1438_v61, %v2506_v13  ;;  %vm557_vm5 = vweird.f32 %v2138_v53  ;;  %v550_v5 = vsel %vm547_vm4, %v549_v62, %v545_v3 }
 0x234   :  { %v553_v63 = vsub.f32 1.0, %v552_v56  ;;  %v1458_v0 = vsel %vm828_vm14, 0.0, %v1457_v59  ;;  %v1452_v6 = vperm.slane %v1436_v54, %v2506_v13  ;;  %v636_v17 = vmul.f32 %v2463_v43, %v550_v5  ;;  %vm558_vm7 = vmor %vm556_vm6, %vm557_vm5  ;;  %v249_v28 = vpop.f32.mrf.mxu2 }
 0x235   :  { %1739 = vrot.lane.b32.xlu2 %v1458_v0, %s2305_s27  ;;  %1771 = vrot.lane.b32.xlu0 %v1446_v2, %s2313_s2  ;;  %v1459_v18 = vrot.slane %v1446_v2, 4  ;;  %v1447_v20 = vrot.slane %v1436_v54, 4  ;;  %v576_v39 = vand.u32 2147483648, %v2517_v58  ;;  %v574_v42 = vand.u32 2147483647, %v2517_v58 }
 0x236   :  { %v554_v16 = vmul.f32 %v2138_v53, %v553_v63  ;;  %2089 = vmatmul.msk.f32.vlgmr.msrb.gmra.mxu0 %vm450_vm2, %v636_v17  ;;  %v1470_v24 = vperm.slane %v636_v17, %v2502_v40  ;;  %v1461_v43 = vrot.slane %v1452_v6, 4  ;;  %v1465_v33 = vrot.slane %v636_v17, 4 }
 0x237   :  { %v1460_v23 = vsel %vm828_vm14, 0.0, %v1459_v18  ;;  %v1448_v27 = vsel %vm828_vm14, 0.0, %v1447_v20  ;;  %vm570_vm10 = vweird.f32 %v2517_v58  ;;  %v577_v51 = vor.u32 1.1754944e-38, %v576_v39 }
 0x238   :  { %v555_v22 = vadd.f32 %v2138_v53, %v554_v16  ;;  %1803 = vrot.lane.b32.xlu1 %v1460_v23, %s2309_s12  ;;  %v1475_v32 = vrot.slane %v1470_v24, 4  ;;  %v1456_v36 = vperm.slane %v1448_v27, %v2506_v13  ;;  %v1462_v37 = vsel %vm828_vm14, 0.0, %v1461_v43 }
 0x239   :  { %v2140_v25 = vpop.eup %2139  ;;  %v1466_v41 = vsel %vm828_vm14, 0.0, %v1465_v33  ;;  %v2561_v15 = vperm.slane %v1470_v24, %v2506_v13  ;;  %vm575_vm12 = vcmp.eq.f32.partialorder %v574_v42, 8.507059e+37 }
 0x23a   :  { %v566_v29 = vmul.f32 %v2140_v25, %v2517_v58  ;;  %v2539_v30 = vpop.xlane.xlu0 %512  ;;  %v559_v31 = vsel %vm558_vm7, %v2138_v53, %v555_v22  ;;  %v1476_v8 = vsel %vm828_vm14, 0.0, %v1475_v32  ;;  %vm571_vm9 = vweird.f32 %v2140_v25 }
 0x23b   :  { %2141 = vrcp.f32 %v2539_v30  ;;  %v564_v35 = vsel %vm561_vm8, %v563_v26, %v559_v31  ;;  %v2550_v9 = vperm.slane %v1476_v8, %v2506_v13  ;;  %v1463_v14 = vrot.slane %v1456_v36, 4  ;;  %vm2563_vm11 = vmor %vm570_vm10, %vm571_vm9 }
 0x23c   :  { %v567_v34 = vsub.f32 1.0, %v566_v29  ;;  %v2547_v38 = vmul.f32 %v2468_v47, %v564_v35  ;;  %v250_v47 = vadd.f32 %v249_v28, %v2481_v60  ;;  %v1474_v48 = vperm.slane %v1466_v41, %v2502_v40  ;;  %v252_v50 = vpop.f32.mrf.mxu2 }
 0x23d   :  { %1835 = vrot.lane.b32.xlu2 %v1452_v6, %s2314_s3  ;;  %1867 = vrot.lane.b32.xlu0 %v1462_v37, %s2315_s15  ;;  %v1497_v46 = vrot.slane %v2550_v9, 4  ;;  %v1464_v56 = vsel %vm828_vm14, 0.0, %v1463_v14  ;;  %v1495_v59 = vrot.slane %v2561_v15, 4  ;;  %v590_v61 = vand.u32 2147483648, %v2539_v30 }
 0x23e   :  { %v568_v10 = vmul.f32 %v2140_v25, %v567_v34  ;;  %2090 = vmatmul.msk.f32.vlgmr.msrb.gmra.mxu1 %vm450_vm2, %v2547_v38  ;;  %776 = vmatpush.msra.mxu0 %v250_v47  ;;  %v1485_v0 = vrot.slane %v1474_v48, 4  ;;  %v588_v3 = vand.u32 2147483647, %v2539_v30  ;;  %v253_v4 = vadd.f32 %v252_v50, %v2481_v60 }
 0x23f   :  { %v1498_v62 = vsel %vm828_vm14, 0.0, %v1497_v46  ;;  %vm584_vm15 = vweird.f32 %v2539_v30  ;;  %v1496_v6 = vsel %vm828_vm14, 0.0, %v1495_v59  ;;  %v591_v16 = vor.u32 1.1754944e-38, %v590_v61 }
 0x240   :  { %v569_v12 = vadd.f32 %v2140_v25, %v568_v10  ;;  %1899 = vrot.lane.b32.xlu1 %v1456_v36, %s2316_s16  ;;  %799 = vmatpush.msra.mxu1 %v253_v4  ;;  %v1486_v17 = vsel %vm828_vm14, 0.0, %v1485_v0  ;;  %v1508_v18 = vperm.slane %v2547_v38, %v2502_v40  ;;  %vm589_vm3 = vcmp.eq.f32.partialorder %v588_v3, 8.507059e+37 }
 0x241   :  { %v2142_v44 = vpop.eup %2141  ;;  %v1503_v26 = vrot.slane %v2547_v38, 4  ;;  %v1494_v27 = vperm.slane %v1486_v17, %v2506_v13 }
 0x242   :  { %v580_v11 = vmul.f32 %v2142_v44, %v2539_v30  ;;  %v2571_v53 = vpop.xlane.xlu1 %515  ;;  %v573_v54 = vsel %vm2563_vm11, %v2140_v25, %v569_v12  ;;  %vm585_vm13 = vweird.f32 %v2142_v44  ;;  %v1490_v25 = vperm.slane %v1474_v48, %v2506_v13 }
 0x243   :  { %2143 = vrcp.f32 %v2571_v53  ;;  %v578_v58 = vsel %vm575_vm12, %v577_v51, %v573_v54  ;;  %vm586_vm1 = vmor %vm584_vm15, %vm585_vm13  ;;  %v604_v29 = vand.u32 2147483648, %v2571_v53  ;;  %v2606_v30 = vperm.slane %v1508_v18, %v2506_v13 }
 0x244   :  { %v581_v55 = vsub.f32 1.0, %v580_v11  ;;  %v2582_v63 = vmul.f32 %v2472_v52, %v578_v58  ;;  %v255_v23 = vpop.f32.mrf.mxu2  ;;  %v1513_v31 = vrot.slane %v1508_v18, 4  ;;  %v602_v34 = vand.u32 2147483647, %v2571_v53 }
 0x245   :  { %1931 = vrot.lane.b32.xlu2 %v1464_v56, %s2317_s17  ;;  %1805 = vrot.lane.b32.xlu0 %v1498_v62, %s2309_s12  ;;  %v256_v32 = vadd.f32 %v255_v23, %v2481_v60  ;;  %v1504_v35 = vsel %vm828_vm14, 0.0, %v1503_v26  ;;  %vm598_vm5 = vweird.f32 %v2571_v53  ;;  %v605_v37 = vor.u32 1.1754944e-38, %v604_v29 }
 0x246   :  { %v582_v2 = vmul.f32 %v2142_v44, %v581_v55  ;;  %2091 = vmatmul.msk.f32.vlgmr.msrb.gmra.mxu2 %vm450_vm2, %v2582_v63  ;;  %v1533_v60 = vrot.slane %v2606_v30, 4  ;;  %v1514_v38 = vsel %vm828_vm14, 0.0, %v1513_v31  ;;  %vm603_vm7 = vcmp.eq.f32.partialorder %v602_v34, 8.507059e+37 }
 0x247   :  { %822 = vmatpush.msra.mxu2 %v256_v32  ;;  %v1512_v41 = vperm.slane %v1504_v35, %v2502_v40  ;;  %v1522_v45 = vperm.slane %v1514_v38, %v2506_v13  ;;  %v1541_v23 = vrot.slane %v2582_v63, 4 }
 0x248   :  { %v583_v5 = vadd.f32 %v2142_v44, %v582_v2  ;;  %1741 = vrot.lane.b32.xlu1 %v1496_v6, %s2305_s27  ;;  %v1534_v48 = vsel %vm828_vm14, 0.0, %v1533_v60 }
 0x249   :  { %v2144_v52 = vpop.eup %2143  ;;  %v1523_v11 = vrot.slane %v1512_v41, 4  ;;  %v1535_v54 = vrot.slane %v1522_v45, 4  ;;  %v1528_v3 = vperm.slane %v1512_v41, %v2506_v13 }
 0x24a   :  { %v587_v20 = vsel %vm586_vm1, %v2142_v44, %v583_v5  ;;  %v594_v21 = vmul.f32 %v2144_v52, %v2571_v53  ;;  %v519_v22 = vpop.xlane.xlu2 %518  ;;  %vm599_vm4 = vweird.f32 %v2144_v52  ;;  %v1501_v44 = vrot.slane %v1494_v27, 4 }
 0x24b   :  { %v592_v24 = vsel %vm589_vm3, %v591_v16, %v587_v20  ;;  %2145 = vrcp.f32 %v519_v22  ;;  %vm600_vm6 = vmor %vm598_vm5, %vm599_vm4  ;;  %v618_v46 = vand.u32 2147483648, %v519_v22  ;;  %v616_v51 = vand.u32 2147483647, %v519_v22 }
 0x24c   :  { %v595_v43 = vsub.f32 1.0, %v594_v21  ;;  %v2600_v28 = vmul.f32 %v2476_v57, %v592_v24  ;;  %v1499_v57 = vrot.slane %v1490_v25, 4  ;;  %vm612_vm9 = vweird.f32 %v519_v22 }
 0x24d   :  { %1773 = vrot.lane.b32.xlu2 %v2550_v9, %s2313_s2  ;;  %1901 = vrot.lane.b32.xlu0 %v1494_v27, %s2316_s16  ;;  %v619_v56 = vor.u32 1.1754944e-38, %v618_v46  ;;  %vm617_vm11 = vcmp.eq.f32.partialorder %v616_v51, 8.507059e+37  ;;  %v1524_v61 = vsel %vm828_vm14, 0.0, %v1523_v11  ;;  %v1536_v2 = vsel %vm828_vm14, 0.0, %v1535_v54 }
 0x24e   :  { %v596_v33 = vmul.f32 %v2144_v52, %v595_v43  ;;  %2092 = vmatmul.msk.f32.vlgmr.msrb.gmra.mxu3 %vm450_vm2, %v2600_v28  ;;  %v1500_v47 = vsel %vm828_vm14, 0.0, %v1499_v57  ;;  %v1532_v6 = vperm.slane %v1524_v61, %v2506_v13  ;;  %v1537_v26 = vrot.slane %v1528_v3, 4 }
 0x24f   :  { %v1584_v34 = vperm.slane %v2600_v28, %v2502_v40  ;;  %vm1963_vm3 = vcmask 130048   ;;  %vm1972_vm4 = vcmask 195584   ;;  %vm1989_vm5 = vcmask 326656  }
 0x250   :  { %v597_v36 = vadd.f32 %v2144_v52, %v596_v33  ;;  %1837 = vrot.lane.b32.xlu1 %v1490_v25, %s2314_s3  ;;  %v1539_v20 = vrot.slane %v1532_v6, 4 }
 0x251   :  { %v2146_v8 = vpop.eup %2145 }
 0x252   :  { %v601_v9 = vsel %vm600_vm6, %v2144_v52, %v597_v36  ;;  %v608_v10 = vmul.f32 %v2146_v8, %v519_v22  ;;  %v522_v39 = vpop.xlane.xlu0 %521  ;;  %vm613_vm8 = vweird.f32 %v2146_v8  ;;  %v1546_v52 = vperm.slane %v2582_v63, %v2502_v40 }
 0x253   :  { %v606_v42 = vsel %vm603_vm7, %v605_v37, %v601_v9  ;;  %2147 = vrcp.f32 %v522_v39  ;;  %vm614_vm10 = vmor %vm612_vm9, %vm613_vm8  ;;  %v632_v5 = vand.u32 2147483648, %v522_v39  ;;  %v630_v17 = vand.u32 2147483647, %v522_v39 }
 0x254   :  { %v609_v12 = vsub.f32 1.0, %v608_v10  ;;  %v2621_v14 = vmul.f32 %v2484_v1, %v606_v42  ;;  %v1502_v1 = vsel %vm828_vm14, 0.0, %v1501_v44  ;;  %vm626_vm13 = vweird.f32 %v522_v39 }
 0x255   :  { %1869 = vrot.lane.b32.xlu2 %v1500_v47, %s2315_s15  ;;  %1743 = vrot.lane.b32.xlu0 %v1534_v48, %s2305_s27  ;;  %v1551_v21 = vrot.slane %v1546_v52, 4  ;;  %vm631_vm1 = vcmp.eq.f32.partialorder %v630_v17, 8.507059e+37  ;;  %v2650_v43 = vperm.slane %v1546_v52, %v2506_v13  ;;  %v1540_v27 = vsel %vm828_vm14, 0.0, %v1539_v20 }
 0x256   :  { %v610_v50 = vmul.f32 %v2146_v8, %v609_v12  ;;  %2093 = vmatmul.msk.f32.vlgmr.msra.gmra.mxu0 %vm450_vm2, %v2621_v14  ;;  %v1542_v63 = vsel %vm828_vm14, 0.0, %v1541_v23  ;;  %v1589_v37 = vrot.slane %v1584_v34, 4  ;;  %v1622_v54 = vperm.slane %v2621_v14, %v2502_v40 }
 0x257   :  { %v1552_v29 = vsel %vm828_vm14, 0.0, %v1551_v21  ;;  %v1571_v31 = vrot.slane %v2650_v43, 4  ;;  %v1550_v33 = vperm.slane %v1542_v63, %v2502_v40  ;;  %vm1998_vm6 = vcmask 392192  }
 0x258   :  { %v611_v53 = vadd.f32 %v2146_v8, %v610_v50  ;;  %1933 = vrot.lane.b32.xlu1 %v1502_v1, %s2317_s17  ;;  %v1560_v32 = vperm.slane %v1552_v29, %v2506_v13  ;;  %v1590_v10 = vsel %vm828_vm14, 0.0, %v1589_v37  ;;  %vm2007_vm7 = vcmask 457728  }
 0x259   :  { %v2148_v55 = vpop.eup %2147  ;;  %v1572_v57 = vsel %vm828_vm14, 0.0, %v1571_v31  ;;  %v1566_v36 = vperm.slane %v1550_v33, %v2506_v13  ;;  %v1598_v47 = vperm.slane %v1590_v10, %v2506_v13  ;;  %vm2016_vm8 = vcmask 516096  }
 0x25a   :  { %v615_v58 = vsel %vm614_vm10, %v2146_v8, %v611_v53  ;;  %v622_v59 = vmul.f32 %v2148_v55, %v522_v39  ;;  %vm627_vm12 = vweird.f32 %v2148_v55  ;;  %v1573_v35 = vrot.slane %v1560_v32, 4 }
 0x25b   :  { %v620_v62 = vsel %vm617_vm11, %v619_v56, %v615_v58  ;;  %vm628_vm15 = vmor %vm626_vm13, %vm627_vm12  ;;  %v1561_v8 = vrot.slane %v1550_v33, 4  ;;  %v1575_v38 = vrot.slane %v1566_v36, 4  ;;  %v1579_v39 = vrot.slane %v2600_v28, 4 }
 0x25c   :  { %v623_v0 = vsub.f32 1.0, %v622_v59  ;;  %v2635_v4 = vmul.f32 %v2490_v7, %v620_v62  ;;  %v633_v7 = vor.u32 1.1754944e-38, %v632_v5  ;;  %v1574_v60 = vsel %vm828_vm14, 0.0, %v1573_v35 }
 0x25d   :  { %1807 = vrot.lane.b32.xlu2 %v1536_v2, %s2309_s12  ;;  %1839 = vrot.lane.b32.xlu0 %v1528_v3, %s2314_s3  ;;  %v1562_v9 = vsel %vm828_vm14, 0.0, %v1561_v8  ;;  %v1576_v42 = vsel %vm828_vm14, 0.0, %v1575_v38  ;;  %v1580_v12 = vsel %vm828_vm14, 0.0, %v1579_v39  ;;  %v1611_v46 = vrot.slane %v1598_v47, 4 }
 0x25e   :  { %v624_v16 = vmul.f32 %v2148_v55, %v623_v0  ;;  %2094 = vmatmul.msk.f32.vlgmr.msra.gmra.mxu1 %vm450_vm2, %v2635_v4  ;;  %v1570_v41 = vperm.slane %v1562_v9, %v2506_v13  ;;  %v1588_v28 = vperm.slane %v1580_v12, %v2502_v40  ;;  %v2700_v58 = vperm.slane %v1622_v54, %v2506_v13 }
 0x25f   :  { %v1612_v51 = vsel %vm828_vm14, 0.0, %v1611_v46  ;;  %v1627_v59 = vrot.slane %v1622_v54, 4  ;;  %v1617_v2 = vrot.slane %v2621_v14, 4  ;;  %v1660_v14 = vperm.slane %v2635_v4, %v2502_v40 }
 0x260   :  { %v625_v18 = vadd.f32 %v2148_v55, %v624_v16  ;;  %1775 = vrot.lane.b32.xlu1 %v1522_v45, %s2313_s2  ;;  %v1577_v44 = vrot.slane %v1570_v41, 4  ;;  %v2682_v45 = vperm.slane %v1584_v34, %v2506_v13  ;;  %v1599_v11 = vrot.slane %v1588_v28, 4 }
 0x261   :  { %v1604_v56 = vperm.slane %v1588_v28, %v2506_v13  ;;  %v1647_v62 = vrot.slane %v2700_v58, 4  ;;  %v1628_v0 = vsel %vm828_vm14, 0.0, %v1627_v59  ;;  %v1618_v16 = vsel %vm828_vm14, 0.0, %v1617_v2 }
 0x262   :  { %v629_v22 = vsel %vm628_vm15, %v2148_v55, %v625_v18  ;;  %v1578_v48 = vsel %vm828_vm14, 0.0, %v1577_v44  ;;  %v1609_v50 = vrot.slane %v2682_v45, 4  ;;  %v1600_v1 = vsel %vm828_vm14, 0.0, %v1599_v11 }
 0x263   :  { %v634_v24 = vsel %vm631_vm1, %v633_v7, %v629_v22  ;;  %v1608_v55 = vperm.slane %v1600_v1, %v2506_v13  ;;  %v1613_v61 = vrot.slane %v1604_v56, 4  ;;  %v1648_v52 = vsel %vm828_vm14, 0.0, %v1647_v62 }
 0x264   :  { %v2647_v25 = vmul.f32 %v2494_v19, %v634_v24  ;;  %v1538_v19 = vsel %vm828_vm14, 0.0, %v1537_v26  ;;  %v1610_v53 = vsel %vm828_vm14, 0.0, %v1609_v50  ;;  %v1626_v20 = vperm.slane %v1618_v16, %v2502_v40 }
 0x265   :  { %1903 = vrot.lane.b32.xlu2 %v1532_v6, %s2316_s16  ;;  %1935 = vrot.lane.b32.xlu0 %v1540_v27, %s2317_s17  ;;  %v1614_v3 = vsel %vm828_vm14, 0.0, %v1613_v61  ;;  %v1615_v5 = vrot.slane %v1608_v55, 4  ;;  %v1636_v6 = vperm.slane %v1628_v0, %v2506_v13  ;;  %v1655_v21 = vrot.slane %v2635_v4, 4 }
 0x266   :  { %2095 = vmatmul.msk.f32.vlgmr.msra.gmra.mxu2 %vm450_vm2, %v2647_v25  ;;  %v1642_v23 = vperm.slane %v1626_v20, %v2506_v13  ;;  %v1637_v24 = vrot.slane %v1626_v20, 4  ;;  %v1665_v26 = vrot.slane %v1660_v14, 4  ;;  %v1698_v31 = vperm.slane %v2647_v25, %v2502_v40 }
 0x267   :  { %v1616_v18 = vsel %vm828_vm14, 0.0, %v1615_v5  ;;  %v1649_v7 = vrot.slane %v1636_v6, 4  ;;  %v1656_v27 = vsel %vm828_vm14, 0.0, %v1655_v21  ;;  %v1693_v10 = vrot.slane %v2647_v25, 4 }
 0x268   :  { %1871 = vrot.lane.b32.xlu1 %v1538_v19, %s2315_s15  ;;  %v1638_v63 = vsel %vm828_vm14, 0.0, %v1637_v24  ;;  %v1666_v19 = vsel %vm828_vm14, 0.0, %v1665_v26  ;;  %v1664_v4 = vperm.slane %v1656_v27, %v2502_v40  ;;  %v1651_v34 = vrot.slane %v1642_v23, 4 }
 0x269   :  { %v1650_v22 = vsel %vm828_vm14, 0.0, %v1649_v7  ;;  %v1674_v33 = vperm.slane %v1666_v19, %v2506_v13  ;;  %v1694_v12 = vsel %vm828_vm14, 0.0, %v1693_v10  ;;  %vm1341_vm9 = vcmask 785408  }
 0x26a   :  { %v1680_v35 = vperm.slane %v1664_v4, %v2506_v13  ;;  %v1652_v37 = vsel %vm828_vm14, 0.0, %v1651_v34  ;;  %v1702_v50 = vperm.slane %v1694_v12, %v2502_v40  ;;  %vm1398_vm10 = vcmask 1040384  }
 0x26c   :  { %v1689_v38 = vrot.slane %v1680_v35, 4  ;;  %v1713_v54 = vrot.slane %v1702_v50, 4  ;;  %v1718_v20 = vperm.slane %v1702_v50, %v2506_v13 }
 0x26d   :  { %1745 = vrot.lane.b32.xlu2 %v1572_v57, %s2305_s27  ;;  %1777 = vrot.lane.b32.xlu0 %v1560_v32, %s2313_s2  ;;  %v2731_v32 = vperm.slane %v1638_v63, %v2506_v13  ;;  %v2735_v57 = vperm.slane %v1660_v14, %v2506_v13 }
 0x26e   :  { %v1714_v2 = vsel %vm828_vm14, 0.0, %v1713_v54  ;;  %v1727_v63 = vrot.slane %v1718_v20, 4 }
 0x270   :  { %1809 = vrot.lane.b32.xlu1 %v1574_v60, %s2309_s12  ;;  %v1685_v60 = vrot.slane %v2735_v57, 4 }
 0x272   :  { %v1686_v39 = vsel %vm828_vm14, 0.0, %v1685_v60 }
 0x275   :  { %1841 = vrot.lane.b32.xlu2 %v1566_v36, %s2314_s3  ;;  %1873 = vrot.lane.b32.xlu0 %v1576_v42, %s2315_s15  ;;  %v1703_v36 = vrot.slane %v1698_v31, 4  ;;  %v1690_v42 = vsel %vm828_vm14, 0.0, %v1689_v38 }
 0x277   :  { %v1704_v9 = vsel %vm828_vm14, 0.0, %v1703_v36  ;;  %v1728_v36 = vsel %vm828_vm14, 0.0, %v1727_v63 }
 0x278   :  { %1905 = vrot.lane.b32.xlu1 %v1570_v41, %s2316_s16  ;;  %v1687_v41 = vrot.slane %v1674_v33, 4 }
 0x27a   :  { %v1688_v28 = vsel %vm828_vm14, 0.0, %v1687_v41 }
 0x27d   :  { %1937 = vrot.lane.b32.xlu2 %v1578_v48, %s2317_s17  ;;  %1811 = vrot.lane.b32.xlu0 %v1612_v51, %s2309_s12  ;;  %v1675_v48 = vrot.slane %v1664_v4, 4 }
 0x27f   :  { %v1676_v11 = vsel %vm828_vm14, 0.0, %v1675_v48 }
 0x280   :  { %1747 = vrot.lane.b32.xlu1 %v1610_v53, %s2305_s27  ;;  %v2768_v61 = vperm.slane %v1676_v11, %v2506_v13 }
 0x285   :  { %1779 = vrot.lane.b32.xlu2 %v1598_v47, %s2313_s2  ;;  %1907 = vrot.lane.b32.xlu0 %v1608_v55, %s2316_s16  ;;  %v1712_v47 = vperm.slane %v1704_v9, %v2506_v13 }
 0x287   :  { %v1725_v25 = vrot.slane %v1712_v47, 4 }
 0x288   :  { %1843 = vrot.lane.b32.xlu1 %v1604_v56, %s2314_s3 }
 0x289   :  { %v1726_v1 = vsel %vm828_vm14, 0.0, %v1725_v25 }
 0x28d   :  { %1875 = vrot.lane.b32.xlu2 %v1614_v3, %s2315_s15  ;;  %1749 = vrot.lane.b32.xlu0 %v1648_v52, %s2305_s27 }
 0x28f   :  { %v1740_v17 = vpop.permute.xlu2 %1739 }
 0x290   :  { %1939 = vrot.lane.b32.xlu1 %v1616_v18, %s2317_s17  ;;  %v1955_v53 = vsel %vm450_vm2, %v2511_v49, %v1740_v17  ;;  %v2771_v49 = vperm.slane %v1698_v31, %v2506_v13  ;;  %v2781_v18 = vperm.slane %v1714_v2, %v2506_v13 }
 0x292   :  { %v1723_v7 = vrot.slane %v2771_v49, 4 }
 0x295   :  { %1813 = vrot.lane.b32.xlu2 %v1650_v22, %s2309_s12  ;;  %1845 = vrot.lane.b32.xlu0 %v1642_v23, %s2314_s3 }
 0x297   :  { %v1836_v29 = vpop.permute.xlu2 %1835 }
 0x298   :  { %1781 = vrot.lane.b32.xlu1 %v1636_v6, %s2313_s2 }
 0x29d   :  { %1909 = vrot.lane.b32.xlu2 %v2731_v32, %s2316_s16  ;;  %1783 = vrot.lane.b32.xlu0 %v1674_v33, %s2313_s2 }
 0x29f   :  { %v1932_v8 = vpop.permute.xlu2 %1931 }
 0x2a0   :  { %1877 = vrot.lane.b32.xlu1 %v1652_v37, %s2315_s15 }
 0x2a5   :  { %1751 = vrot.lane.b32.xlu2 %v1686_v39, %s2305_s27  ;;  %1879 = vrot.lane.b32.xlu0 %v1690_v42, %s2315_s15 }
 0x2a7   :  { %v2752_v44 = vpop.permute.xlu2 %1773  ;;  %v1772_v46 = vpop.permute.xlu0 %1771 }
 0x2a8   :  { %1815 = vrot.lane.b32.xlu1 %v1688_v28, %s2309_s12  ;;  %v1964_v55 = vsel %vm1963_vm3, %v1955_v53, %v1772_v46 }
 0x2aa   :  { %v1804_v51 = vpop.permute.xlu1 %1803 }
 0x2ab   :  { %v1973_v56 = vsel %vm1972_vm4, %v1964_v55, %v1804_v51 }
 0x2ac   :  { %v1981_v3 = vsel %vm110_vm0, %v1973_v56, %v1836_v29  ;;  %v1724_v29 = vsel %vm828_vm14, 0.0, %v1723_v7 }
 0x2ad   :  { %1847 = vrot.lane.b32.xlu2 %v1680_v35, %s2314_s3  ;;  %1817 = vrot.lane.b32.xlu0 %v1726_v1, %s2309_s12 }
 0x2af   :  { %v2765_v59 = vpop.permute.xlu2 %1869  ;;  %v1868_v62 = vpop.permute.xlu0 %1867 }
 0x2b0   :  { %1911 = vrot.lane.b32.xlu1 %v2768_v61, %s2316_s16  ;;  %v1990_v52 = vsel %vm1989_vm5, %v1981_v3, %v1868_v62 }
 0x2b1   :  { %v663_v0 = vpop.f32.mrf.mxu3 }
 0x2b2   :  { %v827_v5 = vrot.slane %v663_v0, 4  ;;  %v833_v6 = vperm.slane %v663_v0, %v2502_v40  ;;  %v1900_v16 = vpop.permute.xlu1 %1899 }
 0x2b3   :  { %v1999_v17 = vsel %vm1998_vm6, %v1990_v52, %v1900_v16  ;;  %v686_v22 = vpop.f32.mrf.mxu0 }
 0x2b4   :  { %v838_v14 = vrot.slane %v833_v6, 4  ;;  %v2008_v21 = vsel %vm2007_vm7, %v1999_v17, %v1932_v8  ;;  %v829_v23 = vsel %vm828_vm14, 0.0, %v827_v5  ;;  %v871_v26 = vperm.slane %v686_v22, %v2502_v40 }
 0x2b5   :  { %1785 = vrot.lane.b32.xlu2 %v1712_v47, %s2313_s2  ;;  %2017 = vst.msk [vmem:[#allocation11] sm:$0x1] %vm2016_vm8, %v2008_v21  ;;  %1913 = vrot.lane.b32.xlu0 %v2781_v18, %s2316_s16  ;;  %v837_v19 = vperm.slane %v829_v23, %v2502_v40  ;;  %v866_v31 = vrot.slane %v686_v22, 4  ;;  %v2811_v10 = vperm.slane %v833_v6, %v2506_v13 }
 0x2b6   :  { %v839_v4 = vsel %vm828_vm14, 0.0, %v838_v14  ;;  %v2799_v34 = vperm.slane %v871_v26, %v2506_v13  ;;  %v876_v37 = vrot.slane %v871_v26, 4 }
 0x2b7   :  { %v2791_v24 = vpop.permute.xlu2 %1807  ;;  %v1806_v27 = vpop.permute.xlu0 %1805  ;;  %v847_v35 = vperm.slane %v839_v4, %v2506_v13  ;;  %v848_v8 = vrot.slane %v837_v19, 4  ;;  %v867_v38 = vsel %vm828_vm14, 0.0, %v866_v31  ;;  %v858_v50 = vrot.slane %v2811_v10, 4 }
 0x2b8   :  { %1753 = vrot.lane.b32.xlu1 %v1724_v29, %s2305_s27  ;;  %v896_v41 = vrot.slane %v2799_v34, 4  ;;  %v875_v47 = vperm.slane %v867_v38, %v2502_v40  ;;  %v877_v12 = vsel %vm828_vm14, 0.0, %v876_v37  ;;  %v2841_v6 = vperm.slane %v837_v19, %v2506_v13  ;;  %s2044_s27 = sshll.u32 %s3221_s5, 4  ;;  %s2323_s5 = smov 1   ;;  %s2045_s27 = int_to_ptr.hbm [resolvable:$true] %s2044_s27 }
 0x2b9   :  { %v885_v51 = vperm.slane %v877_v12, %v2506_v13  ;;  %v859_v55 = vsel %vm828_vm14, 0.0, %v858_v50  ;;  %v860_v5 = vrot.slane %v847_v35, 4 }
 0x2ba   :  { %v1742_v33 = vpop.permute.xlu1 %1741  ;;  %v897_v25 = vsel %vm828_vm14, 0.0, %v896_v41  ;;  %v886_v11 = vrot.slane %v875_v47, 4  ;;  %v862_v14 = vrot.slane %v2841_v6, 4  ;;  %v2853_v21 = vperm.slane %v875_v47, %v2506_v13 }
 0x2bb   :  { %v1956_v60 = vsel %vm450_vm2, %v2561_v15, %v1742_v33  ;;  %v849_v15 = vsel %vm828_vm14, 0.0, %v848_v8  ;;  %v898_v56 = vrot.slane %v885_v51, 4  ;;  %v709_v16 = vpop.f32.mrf.mxu1 }
 0x2bc   :  { %v1965_v42 = vsel %vm1963_vm3, %v1956_v60, %v2752_v44  ;;  %v2822_v48 = vperm.slane %v849_v15, %v2506_v13  ;;  %v887_v62 = vsel %vm828_vm14, 0.0, %v886_v11  ;;  %v909_v22 = vperm.slane %v709_v16, %v2502_v40 }
 0x2bd   :  { %1881 = vrot.lane.b32.xlu2 %v1728_v36, %s2315_s15  ;;  %1172 = vrot.lane.b32.xlu0 %v847_v35, %s2318_s18  ;;  %v1974_v28 = vsel %vm1972_vm4, %v1965_v42, %v1806_v27  ;;  %v895_v52 = vperm.slane %v887_v62, %v2506_v13  ;;  %v904_v26 = vrot.slane %v709_v16, 4  ;;  %v863_v63 = vsel %vm828_vm14, 0.0, %v862_v14 }
 0x2be   :  { %v900_v19 = vrot.slane %v2853_v21, 4  ;;  %v914_v4 = vrot.slane %v909_v22, 4  ;;  %v2862_v31 = vperm.slane %v909_v22, %v2506_v13  ;;  %v864_v12 = vrot.slane %v2822_v48, 4 }
 0x2bf   :  { %v2808_v9 = vpop.permute.xlu2 %1903  ;;  %v1902_v39 = vpop.permute.xlu0 %1901  ;;  %v902_v23 = vrot.slane %v895_v52, 4  ;;  %v905_v36 = vsel %vm828_vm14, 0.0, %v904_v26 }
 0x2c0   :  { %1849 = vrot.lane.b32.xlu1 %v1718_v20, %s2314_s3  ;;  %v861_v20 = vsel %vm828_vm14, 0.0, %v860_v5  ;;  %v901_v60 = vsel %vm828_vm14, 0.0, %v900_v19  ;;  %v913_v38 = vperm.slane %v905_v36, %v2502_v40  ;;  %v934_v41 = vrot.slane %v2862_v31, 4 }
 0x2c1   :  { %v903_v35 = vsel %vm828_vm14, 0.0, %v902_v23 }
 0x2c2   :  { %v1838_v46 = vpop.permute.xlu1 %1837  ;;  %v2885_v50 = vperm.slane %v913_v38, %v2506_v13 }
 0x2c3   :  { %v1982_v44 = vsel %vm110_vm0, %v1974_v28, %v1838_v46  ;;  %v924_v46 = vrot.slane %v913_v38, 4 }
 0x2c4   :  { %v1991_v1 = vsel %vm1989_vm5, %v1982_v44, %v2765_v59  ;;  %v899_v59 = vsel %vm828_vm14, 0.0, %v898_v56 }
 0x2c5   :  { %1142 = vrot.lane.b32.xlu2 %v897_v25, %s2314_s3  ;;  %1268 = vrot.lane.b32.xlu0 %v2822_v48, %s2318_s18  ;;  %v2000_v0 = vsel %vm1998_vm6, %v1991_v1, %v1902_v39  ;;  %v915_v39 = vsel %vm828_vm14, 0.0, %v914_v4  ;;  %v935_v25 = vsel %vm828_vm14, 0.0, %v934_v41  ;;  %v865_v1 = vsel %vm828_vm14, 0.0, %v864_v12 }
 0x2c6   :  { %v925_v56 = vsel %vm828_vm14, 0.0, %v924_v46 }
 0x2c7   :  { %v2831_v53 = vpop.permute.xlu2 %1745  ;;  %v1744_v54 = vpop.permute.xlu0 %1743 }
 0x2c8   :  { %1140 = vrot.lane.b32.xlu1 %v859_v55, %s2314_s3  ;;  %v1957_v29 = vsel %vm450_vm2, %v2606_v30, %v1744_v54  ;;  %v938_v55 = vrot.slane %v2885_v50, 4  ;;  %v1958_v5 = vsel %vm450_vm2, %v2650_v43, %v2831_v53 }
 0x2c9   :  { %v732_v44 = vpop.f32.mrf.mxu2 }
 0x2ca   :  { %v1934_v2 = vpop.permute.xlu1 %1933  ;;  %v947_v54 = vperm.slane %v732_v44, %v2502_v40  ;;  %v942_v62 = vrot.slane %v732_v44, 4 }
 0x2cb   :  { %v2009_v3 = vsel %vm2007_vm7, %v2000_v0, %v1934_v2 }
 0x2cc   :  { %2018 = vst.msk [vmem:[#allocation11 + $0x1] sm:$0x1] %vm2016_vm8, %v2009_v3  ;;  %v933_v3 = vperm.slane %v925_v56, %v2506_v13  ;;  %v943_v16 = vsel %vm828_vm14, 0.0, %v942_v62 }
 0x2cd   :  { %1174 = vrot.lane.b32.xlu2 %v885_v51, %s2318_s18  ;;  %1206 = vrot.lane.b32.xlu0 %v899_v59, %s2319_s19  ;;  %v952_v59 = vrot.slane %v947_v54, 4  ;;  %v951_v26 = vperm.slane %v943_v16, %v2502_v40 }
 0x2ce   :  { %v940_v23 = vrot.slane %v933_v3, 4 }
 0x2cf   :  { %v2848_v17 = vpop.permute.xlu2 %1841  ;;  %v1840_v7 = vpop.permute.xlu0 %1839  ;;  %v953_v43 = vsel %vm828_vm14, 0.0, %v952_v59 }
 0x2d0   :  { %1204 = vrot.lane.b32.xlu1 %v861_v20, %s2319_s19  ;;  %v961_v4 = vperm.slane %v953_v43, %v2506_v13 }
 0x2d2   :  { %v1776_v27 = vpop.permute.xlu1 %1775  ;;  %v974_v12 = vrot.slane %v961_v4, 4 }
 0x2d3   :  { %v1966_v33 = vsel %vm1963_vm3, %v1957_v29, %v1776_v27 }
 0x2d4   :  { %v1975_v30 = vsel %vm1972_vm4, %v1966_v33, %v2791_v24  ;;  %v923_v24 = vperm.slane %v915_v39, %v2506_v13  ;;  %v941_v33 = vsel %vm828_vm14, 0.0, %v940_v23 }
 0x2d5   :  { %1236 = vrot.lane.b32.xlu2 %v863_v63, %s2314_s3  ;;  %1302 = vrot.lane.b32.xlu0 %v903_v35, %s2319_s19  ;;  %v1983_v42 = vsel %vm110_vm0, %v1975_v30, %v1840_v7  ;;  %v2915_v63 = vperm.slane %v947_v54, %v2506_v13  ;;  %v962_v35 = vrot.slane %v951_v26, 4  ;;  %v778_v30 = vpop.f32.mrf.mxu0 }
 0x2d6   :  { %v1023_v39 = vperm.slane %v778_v30, %v2502_v40 }
 0x2d7   :  { %v1938_v8 = vpop.permute.xlu2 %1937  ;;  %v1936_v37 = vpop.permute.xlu0 %1935  ;;  %v972_v38 = vrot.slane %v2915_v63, 4  ;;  %v963_v41 = vsel %vm828_vm14, 0.0, %v962_v35 }
 0x2d8   :  { %1238 = vrot.lane.b32.xlu1 %v901_v60, %s2314_s3  ;;  %v2937_v46 = vperm.slane %v1023_v39, %v2506_v13 }
 0x2da   :  { %v1872_v15 = vpop.permute.xlu1 %1871 }
 0x2db   :  { %v1992_v47 = vsel %vm1989_vm5, %v1983_v42, %v1872_v15  ;;  %v971_v15 = vperm.slane %v963_v41, %v2506_v13 }
 0x2dc   :  { %v2001_v28 = vsel %vm1998_vm6, %v1992_v47, %v2808_v9  ;;  %v936_v9 = vrot.slane %v923_v24, 4  ;;  %v973_v47 = vsel %vm828_vm14, 0.0, %v972_v38 }
 0x2dd   :  { %1270 = vrot.lane.b32.xlu2 %v895_v52, %s2318_s18  ;;  %v2010_v51 = vsel %vm2007_vm7, %v2001_v28, %v1936_v37  ;;  %1144 = vrot.lane.b32.xlu0 %v935_v25, %s2314_s3  ;;  %v939_v52 = vsel %vm828_vm14, 0.0, %v938_v55  ;;  %v1048_v55 = vrot.slane %v2937_v46, 4 }
 0x2de   :  { %2019 = vst.msk [vmem:[#allocation11 + $0x2] sm:$0x1] %vm2016_vm8, %v2010_v51  ;;  %v937_v2 = vsel %vm828_vm14, 0.0, %v936_v9 }
 0x2df   :  { %v2890_v48 = vpop.permute.xlu2 %1779  ;;  %v1778_v11 = vpop.permute.xlu0 %1777 }
 0x2e0   :  { %1300 = vrot.lane.b32.xlu1 %v865_v1, %s2319_s19  ;;  %v1967_v7 = vsel %vm1963_vm3, %v1958_v5, %v1778_v11  ;;  %v975_v11 = vsel %vm828_vm14, 0.0, %v974_v12 }
 0x2e2   :  { %v1810_v0 = vpop.permute.xlu1 %1809 }
 0x2e3   :  { %v1976_v20 = vsel %vm1972_vm4, %v1967_v7, %v1810_v0 }
 0x2e4   :  { %v1984_v53 = vsel %vm110_vm0, %v1976_v20, %v2848_v17  ;;  %v755_v17 = vpop.f32.mrf.mxu3 }
 0x2e5   :  { %1208 = vrot.lane.b32.xlu2 %v937_v2, %s2319_s19  ;;  %1240 = vrot.lane.b32.xlu0 %v939_v52, %s2314_s3  ;;  %v980_v9 = vrot.slane %v755_v17, 4 }
 0x2e7   :  { %v1876_v14 = vpop.permute.xlu2 %1875  ;;  %v1874_v22 = vpop.permute.xlu0 %1873  ;;  %v981_v5 = vsel %vm828_vm14, 0.0, %v980_v9 }
 0x2e8   :  { %1176 = vrot.lane.b32.xlu1 %v923_v24, %s2318_s18  ;;  %v1993_v27 = vsel %vm1989_vm5, %v1984_v53, %v1874_v22  ;;  %v2934_v24 = vperm.slane %v951_v26, %v2506_v13  ;;  %v989_v20 = vperm.slane %v981_v5, %v2502_v40 }
 0x2ea   :  { %v1906_v29 = vpop.permute.xlu1 %1905  ;;  %v976_v1 = vrot.slane %v2934_v24, 4 }
 0x2eb   :  { %v2002_v19 = vsel %vm1998_vm6, %v1993_v27, %v1906_v29 }
 0x2ec   :  { %v2011_v36 = vsel %vm2007_vm7, %v2002_v19, %v1938_v8  ;;  %v985_v8 = vperm.slane %v755_v17, %v2502_v40  ;;  %v977_v2 = vsel %vm828_vm14, 0.0, %v976_v1  ;;  %v801_v1 = vpop.f32.mrf.mxu1 }
 0x2ed   :  { %1304 = vrot.lane.b32.xlu2 %v941_v33, %s2319_s19  ;;  %2020 = vst.msk [vmem:[#allocation11 + $0x3] sm:$0x1] %vm2016_vm8, %v2011_v36  ;;  %1178 = vrot.lane.b32.xlu0 %v961_v4, %s2318_s18  ;;  %v1000_v4 = vrot.slane %v989_v20, 4  ;;  %v1028_v36 = vrot.slane %v1023_v39, 4 }
 0x2ee   :  { %v990_v28 = vrot.slane %v985_v8, 4  ;;  %v2963_v22 = vperm.slane %v985_v8, %v2506_v13 }
 0x2ef   :  { %v2924_v37 = vpop.permute.xlu2 %1813  ;;  %v1812_v60 = vpop.permute.xlu0 %1811  ;;  %v1001_v41 = vsel %vm828_vm14, 0.0, %v1000_v4  ;;  %v1029_v8 = vsel %vm828_vm14, 0.0, %v1028_v36 }
 0x2f0   :  { %1272 = vrot.lane.b32.xlu1 %v933_v3, %s2318_s18  ;;  %v991_v56 = vsel %vm828_vm14, 0.0, %v990_v28  ;;  %v978_v3 = vrot.slane %v971_v15, 4  ;;  %v1010_v35 = vrot.slane %v2963_v22, 4  ;;  %v1037_v28 = vperm.slane %v1029_v8, %v2506_v13 }
 0x2f1   :  { %v999_v52 = vperm.slane %v991_v56, %v2506_v13 }
 0x2f2   :  { %v1748_v42 = vpop.permute.xlu1 %1747  ;;  %v979_v43 = vsel %vm828_vm14, 0.0, %v978_v3  ;;  %v1011_v38 = vsel %vm828_vm14, 0.0, %v1010_v35  ;;  %v1056_v3 = vrot.slane %v801_v1, 4 }
 0x2f3   :  { %v1959_v25 = vsel %vm450_vm2, %v2682_v45, %v1748_v42  ;;  %v1018_v45 = vrot.slane %v778_v30, 4  ;;  %v1012_v27 = vrot.slane %v999_v52, 4 }
 0x2f4   :  { %v1968_v54 = vsel %vm1963_vm3, %v1959_v25, %v2890_v48  ;;  %v1049_v48 = vsel %vm828_vm14, 0.0, %v1048_v55 }
 0x2f5   :  { %1146 = vrot.lane.b32.xlu2 %v973_v47, %s2314_s3  ;;  %1274 = vrot.lane.b32.xlu0 %v971_v15, %s2318_s18  ;;  %v1977_v0 = vsel %vm1972_vm4, %v1968_v54, %v1812_v60  ;;  %v1019_v16 = vsel %vm828_vm14, 0.0, %v1018_v45  ;;  %v1009_v47 = vperm.slane %v1001_v41, %v2506_v13  ;;  %v2998_v54 = vperm.slane %v989_v20, %v2506_v13 }
 0x2f6   :  { %v1027_v53 = vperm.slane %v1019_v16, %v2502_v40  ;;  %v1050_v45 = vrot.slane %v1037_v28, 4 }
 0x2f7   :  { %v2943_v44 = vpop.permute.xlu2 %1909  ;;  %v1908_v51 = vpop.permute.xlu0 %1907 }
 0x2f8   :  { %1210 = vrot.lane.b32.xlu1 %v975_v11, %s2319_s19  ;;  %v2973_v30 = vperm.slane %v1027_v53, %v2506_v13  ;;  %v1038_v25 = vrot.slane %v1027_v53, 4 }
 0x2fa   :  { %v1844_v62 = vpop.permute.xlu1 %1843  ;;  %v1052_v39 = vrot.slane %v2973_v30, 4 }
 0x2fb   :  { %v1985_v59 = vsel %vm110_vm0, %v1977_v0, %v1844_v62  ;;  %v1016_v0 = vrot.slane %v1009_v47, 4 }
 0x2fc   :  { %v1994_v23 = vsel %vm1989_vm5, %v1985_v59, %v1876_v14  ;;  %v1013_v14 = vsel %vm828_vm14, 0.0, %v1012_v27  ;;  %v1053_v11 = vsel %vm828_vm14, 0.0, %v1052_v39 }
 0x2fd   :  { %1242 = vrot.lane.b32.xlu2 %v977_v2, %s2314_s3  ;;  %1150 = vrot.lane.b32.xlu0 %v1049_v48, %s2314_s3  ;;  %v2003_v29 = vsel %vm1998_vm6, %v1994_v23, %v1908_v51  ;;  %v1039_v2 = vsel %vm828_vm14, 0.0, %v1038_v25  ;;  %v1051_v48 = vsel %vm828_vm14, 0.0, %v1050_v45  ;;  %v1057_v23 = vsel %vm828_vm14, 0.0, %v1056_v3 }
 0x2ff   :  { %v1752_v7 = vpop.permute.xlu2 %1751  ;;  %v1750_v26 = vpop.permute.xlu0 %1749 }
 0x300   :  { %1306 = vrot.lane.b32.xlu1 %v979_v43, %s2319_s19  ;;  %v1960_v42 = vsel %vm450_vm2, %v2700_v58, %v1750_v26  ;;  %v1961_v55 = vsel %vm450_vm2, %v2735_v57, %v1752_v7  ;;  %v1047_v57 = vperm.slane %v1039_v2, %v2506_v13  ;;  %v1017_v7 = vsel %vm828_vm14, 0.0, %v1016_v0  ;;  %v824_v26 = vpop.f32.mrf.mxu2 }
 0x302   :  { %v1940_v19 = vpop.permute.xlu1 %1939 }
 0x303   :  { %v2012_v33 = vsel %vm2007_vm7, %v2003_v29, %v1940_v19  ;;  %v1054_v29 = vrot.slane %v1047_v57, 4  ;;  %v1065_v19 = vperm.slane %v1057_v23, %v2502_v40 }
 0x304   :  { %2021 = vst.msk [vmem:[#allocation11 + $0x4] sm:$0x1] %vm2016_vm8, %v2012_v33  ;;  %v1094_v33 = vrot.slane %v824_v26, 4 }
 0x305   :  { %1180 = vrot.lane.b32.xlu2 %v999_v52, %s2318_s18  ;;  %1212 = vrot.lane.b32.xlu0 %v1013_v14, %s2319_s19  ;;  %v1014_v52 = vrot.slane %v2998_v54, 4  ;;  %v1076_v41 = vrot.slane %v1065_v19, 4 }
 0x307   :  { %v1848_v17 = vpop.permute.xlu2 %1847  ;;  %v1846_v60 = vpop.permute.xlu0 %1845  ;;  %v1015_v27 = vsel %vm828_vm14, 0.0, %v1014_v52  ;;  %v1077_v25 = vsel %vm828_vm14, 0.0, %v1076_v41 }
 0x308   :  { %1148 = vrot.lane.b32.xlu1 %v1011_v38, %s2314_s3  ;;  %v1055_v38 = vsel %vm828_vm14, 0.0, %v1054_v29 }
 0x30a   :  { %v1782_v15 = vpop.permute.xlu1 %1781 }
 0x30b   :  { %v1969_v12 = vsel %vm1963_vm3, %v1960_v42, %v1782_v15  ;;  %v1095_v15 = vsel %vm828_vm14, 0.0, %v1094_v33 }
 0x30c   :  { %v1978_v51 = vsel %vm1972_vm4, %v1969_v12, %v2924_v37  ;;  %v1061_v37 = vperm.slane %v801_v1, %v2502_v40 }
 0x30d   :  { %1276 = vrot.lane.b32.xlu2 %v1009_v47, %s2318_s18  ;;  %1246 = vrot.lane.b32.xlu0 %v1053_v11, %s2314_s3  ;;  %v1986_v58 = vsel %vm110_vm0, %v1978_v51, %v1846_v60  ;;  %v3044_v11 = vperm.slane %v1065_v19, %v2506_v13 }
 0x30e   :  { %v1066_v16 = vrot.slane %v1061_v37, 4  ;;  %v3026_v36 = vperm.slane %v1061_v37, %v2506_v13 }
 0x30f   :  { %v2995_v9 = vpop.permute.xlu2 %1785  ;;  %v1784_v56 = vpop.permute.xlu0 %1783  ;;  %v1090_v3 = vrot.slane %v3044_v11, 4 }
 0x310   :  { %v1970_v62 = vsel %vm1963_vm3, %v1961_v55, %v1784_v56  ;;  %1182 = vrot.lane.b32.xlu1 %v1037_v28, %s2318_s18  ;;  %v1067_v4 = vsel %vm828_vm14, 0.0, %v1066_v16  ;;  %v1086_v28 = vrot.slane %v3026_v36, 4  ;;  %v1085_v55 = vperm.slane %v1077_v25, %v2506_v13 }
 0x311   :  { %v1075_v60 = vperm.slane %v1067_v4, %v2506_v13 }
 0x312   :  { %v1878_v5 = vpop.permute.xlu1 %1877  ;;  %v1087_v56 = vsel %vm828_vm14, 0.0, %v1086_v28  ;;  %v1092_v16 = vrot.slane %v1085_v55, 4 }
 0x313   :  { %v1995_v59 = vsel %vm1989_vm5, %v1986_v58, %v1878_v5  ;;  %v1088_v45 = vrot.slane %v1075_v60, 4 }
 0x314   :  { %v3014_v20 = vsel %vm1998_vm6, %v1995_v59, %v2943_v44  ;;  %v1099_v44 = vperm.slane %v824_v26, %v2502_v40  ;;  %v1093_v19 = vsel %vm828_vm14, 0.0, %v1092_v16 }
 0x315   :  { %1214 = vrot.lane.b32.xlu2 %v1051_v48, %s2319_s19  ;;  %1308 = vrot.lane.b32.xlu0 %v1017_v7, %s2319_s19  ;;  %v1089_v2 = vsel %vm828_vm14, 0.0, %v1088_v45 }
 0x316   :  { %v1104_v39 = vrot.slane %v1099_v44, 4  ;;  %v3071_v29 = vperm.slane %v1099_v44, %v2506_v13 }
 0x317   :  { %v3018_v43 = vpop.permute.xlu2 %1881  ;;  %v1880_v53 = vpop.permute.xlu0 %1879 }
 0x318   :  { %1244 = vrot.lane.b32.xlu1 %v1015_v27, %s2314_s3  ;;  %v1105_v51 = vsel %vm828_vm14, 0.0, %v1104_v39 }
 0x319   :  { %v1113_v37 = vperm.slane %v1105_v51, %v2506_v13 }
 0x31a   :  { %v1816_v35 = vpop.permute.xlu1 %1815 }
 0x31b   :  { %v1979_v14 = vsel %vm1972_vm4, %v1970_v62, %v1816_v35  ;;  %v1126_v5 = vrot.slane %v1113_v37, 4  ;;  %v1124_v35 = vrot.slane %v3071_v29, 4 }
 0x31c   :  { %v1987_v8 = vsel %vm110_vm0, %v1979_v14, %v1848_v17  ;;  %v1103_v17 = vperm.slane %v1095_v15, %v2502_v40 }
 0x31d   :  { %1310 = vrot.lane.b32.xlu2 %v1055_v38, %s2319_s19  ;;  %1184 = vrot.lane.b32.xlu0 %v1075_v60, %s2318_s18  ;;  %v1996_v42 = vsel %vm1989_vm5, %v1987_v8, %v1880_v53  ;;  %v1127_v23 = vsel %vm828_vm14, 0.0, %v1126_v5  ;;  %v1125_v39 = vsel %vm828_vm14, 0.0, %v1124_v35 }
 0x31e   :  { %v1114_v62 = vrot.slane %v1103_v17, 4  ;;  %v3086_v41 = vperm.slane %v1103_v17, %v2506_v13  ;;  %v1691_v17 = vrot.slane %v2768_v61, 4 }
 0x31f   :  { %v3036_v47 = vpop.permute.xlu2 %1142  ;;  %v1818_v12 = vpop.permute.xlu0 %1817 }
 0x320   :  { %1278 = vrot.lane.b32.xlu1 %v1047_v57, %s2318_s18  ;;  %v1115_v59 = vsel %vm828_vm14, 0.0, %v1114_v62  ;;  %v1091_v57 = vsel %vm828_vm14, 0.0, %v1090_v3  ;;  %v1128_v15 = vrot.slane %v3086_v41, 4 }
 0x321   :  { %v1123_v26 = vperm.slane %v1115_v59, %v2506_v13 }
 0x322   :  { %v1912_v1 = vpop.permute.xlu1 %1911  ;;  %v1129_v13 = vsel %vm828_vm14, 0.0, %v1128_v15 }
 0x323   :  { %v3047_v58 = vsel %vm1998_vm6, %v1996_v42, %v1912_v1  ;;  %v1729_v1 = vrot.slane %v2781_v18, 4  ;;  %v1325_v18 = vsel %vm110_vm0, %v2799_v34, %v3036_v47 }
 0x325   :  { %1152 = vrot.lane.b32.xlu2 %v1087_v56, %s2314_s3  ;;  %1280 = vrot.lane.b32.xlu0 %v1085_v55, %s2318_s18  ;;  %v1730_v45 = vsel %vm828_vm14, 0.0, %v1729_v1 }
 0x327   :  { %v3054_v40 = vpop.permute.xlu2 %1174  ;;  %v1914_v0 = vpop.permute.xlu0 %1913 }
 0x328   :  { %1216 = vrot.lane.b32.xlu1 %v1089_v2, %s2319_s19 }
 0x32a   :  { %v1754_v48 = vpop.permute.xlu1 %1753 }
 0x32b   :  { %v1962_v52 = vsel %vm450_vm2, %v2771_v49, %v1754_v48  ;;  %vm1332_vm2 = vcmask 523264  }
 0x32c   :  { %v1971_v7 = vsel %vm1963_vm3, %v1962_v52, %v2995_v9  ;;  %v1130_v9 = vrot.slane %v1123_v26, 4  ;;  %v1334_v3 = vsel %vm1332_vm2, %v1325_v18, %v3054_v40 }
 0x32d   :  { %1248 = vrot.lane.b32.xlu2 %v1091_v57, %s2314_s3  ;;  %1218 = vrot.lane.b32.xlu0 %v1127_v23, %s2319_s19  ;;  %v1980_v53 = vsel %vm1972_vm4, %v1971_v7, %v1818_v12 }
 0x32e   :  { %v1131_v60 = vsel %vm828_vm14, 0.0, %v1130_v9 }
 0x32f   :  { %v1237_v27 = vpop.permute.xlu2 %1236  ;;  %v1173_v49 = vpop.permute.xlu0 %1172 }
 0x330   :  { %1312 = vrot.lane.b32.xlu1 %v1093_v19, %s2319_s19  ;;  %v1350_v34 = vsel %vm110_vm0, %v2841_v6, %v1237_v27 }
 0x332   :  { %v1850_v4 = vpop.permute.xlu1 %1849 }
 0x333   :  { %v1988_v33 = vsel %vm110_vm0, %v1980_v53, %v1850_v4 }
 0x334   :  { %v1997_v14 = vsel %vm1989_vm5, %v1988_v33, %v3018_v43  ;;  %v1653_v43 = vrot.slane %v2731_v32, 4  ;;  %v1692_v32 = vsel %vm828_vm14, 0.0, %v1691_v17 }
 0x335   :  { %1186 = vrot.lane.b32.xlu2 %v1113_v37, %s2318_s18  ;;  %1314 = vrot.lane.b32.xlu0 %v1131_v60, %s2319_s19  ;;  %v3083_v44 = vsel %vm1998_vm6, %v1997_v14, %v1914_v0  ;;  %v1415_v37 = vlaneseq }
 0x336   :  { %v1654_v12 = vsel %vm828_vm14, 0.0, %v1653_v43 }
 0x337   :  { %v1271_v38 = vpop.permute.xlu2 %1270  ;;  %v1269_v8 = vpop.permute.xlu0 %1268  ;;  %vm3112_vm14 = vcmp.lt.s32.totalorder %v1415_v37, 256 }
 0x338   :  { %1154 = vrot.lane.b32.xlu1 %v1125_v39, %s2314_s3  ;;  %v1358_v40 = vsel %vm1332_vm2, %v1350_v34, %v1269_v8 }
 0x33a   :  { %v1141_v42 = vpop.permute.xlu1 %1140 }
 0x33b   :  { %v1324_v47 = vsel %vm110_vm0, %v2811_v10, %v1141_v42 }
 0x33c   :  { %v1333_v23 = vsel %vm1332_vm2, %v1324_v47, %v1173_v49 }
 0x33d   :  { %1282 = vrot.lane.b32.xlu2 %v1123_v26, %s2318_s18  ;;  %1941 = vrot.lane.b32.xlu0 %v1654_v12, %s2317_s17 }
 0x33f   :  { %v1209_v28 = vpop.permute.xlu2 %1208  ;;  %v1207_v25 = vpop.permute.xlu0 %1206 }
 0x340   :  { %1250 = vrot.lane.b32.xlu1 %v1129_v13, %s2314_s3 }
 0x342   :  { %v1205_v51 = vpop.permute.xlu1 %1204 }
 0x343   :  { %v1342_v53 = vsel %vm1341_vm9, %v1333_v23, %v1205_v51 }
 0x345   :  { %1943 = vrot.lane.b32.xlu2 %v1692_v32, %s2317_s17 }
 0x347   :  { %v1305_v55 = vpop.permute.xlu2 %1304  ;;  %v1303_v56 = vpop.permute.xlu0 %1302 }
 0x348   :  { %1945 = vrot.lane.b32.xlu1 %v1730_v45, %s2317_s17 }
 0x34a   :  { %v1239_v62 = vpop.permute.xlu1 %1238 }
 0x34b   :  { %v1351_v61 = vsel %vm110_vm0, %v2853_v21, %v1239_v62  ;;  %v1343_v21 = vsel %vm1341_vm9, %v1334_v3, %v1207_v25 }
 0x34c   :  { %v1359_v0 = vsel %vm1332_vm2, %v1351_v61, %v1271_v38 }
 0x34d   :  { %v1367_v2 = vsel %vm1341_vm9, %v1359_v0, %v1303_v56 }
 0x34e   :  { %v1391_v59 = vrot.slane %v1367_v2, 7 }
 0x34f   :  { %v1147_v48 = vpop.permute.xlu2 %1146  ;;  %v1145_v52 = vpop.permute.xlu0 %1144 }
 0x350   :  { %v1400_v57 = vsel %vm1398_vm10, %v1343_v21, %v1391_v59  ;;  %v1326_v33 = vsel %vm110_vm0, %v2862_v31, %v1145_v52  ;;  %v1327_v51 = vsel %vm110_vm0, %v2915_v63, %v1147_v48 }
 0x351   :  { %1420 = vst.msk [vmem:[#allocation10 + $0x2] sm:$0x3] %vm3112_vm14, %v1400_v57 }
 0x352   :  { %v1301_v16 = vpop.permute.xlu1 %1300 }
 0x353   :  { %v1366_v7 = vsel %vm1341_vm9, %v1358_v40, %v1301_v16 }
 0x354   :  { %v1390_v26 = vrot.slane %v1366_v7, 7 }
 0x356   :  { %v1399_v19 = vsel %vm1398_vm10, %v1342_v53, %v1390_v26 }
 0x357   :  { %v1243_v9 = vpop.permute.xlu2 %1242  ;;  %1419 = vst.msk [vmem:[#allocation10] sm:$0x3] %vm3112_vm14, %v1399_v19  ;;  %v1241_v10 = vpop.permute.xlu0 %1240 }
 0x358   :  { %v1352_v35 = vsel %vm110_vm0, %v2885_v50, %v1241_v10  ;;  %v1353_v25 = vsel %vm110_vm0, %v2934_v24, %v1243_v9 }
 0x35a   :  { %v1177_v6 = vpop.permute.xlu1 %1176 }
 0x35b   :  { %v1335_v14 = vsel %vm1332_vm2, %v1326_v33, %v1177_v6 }
 0x35c   :  { %v1344_v39 = vsel %vm1341_vm9, %v1335_v14, %v1209_v28 }
 0x35f   :  { %v1181_v27 = vpop.permute.xlu2 %1180  ;;  %v1179_v4 = vpop.permute.xlu0 %1178 }
 0x360   :  { %v1336_v32 = vsel %vm1332_vm2, %v1327_v51, %v1179_v4 }
 0x362   :  { %v1273_v49 = vpop.permute.xlu1 %1272 }
 0x363   :  { %v1360_v60 = vsel %vm1332_vm2, %v1352_v35, %v1273_v49 }
 0x364   :  { %v1368_v38 = vsel %vm1341_vm9, %v1360_v60, %v1305_v55 }
 0x365   :  { %v1392_v8 = vrot.slane %v1368_v38, 7 }
 0x367   :  { %v1277_v43 = vpop.permute.xlu2 %1276  ;;  %v1401_v42 = vsel %vm1398_vm10, %v1344_v39, %v1392_v8  ;;  %v1275_v15 = vpop.permute.xlu0 %1274 }
 0x368   :  { %1421 = vst.msk [vmem:[#allocation10 + $0x4] sm:$0x3] %vm3112_vm14, %v1401_v42  ;;  %v1361_v13 = vsel %vm1332_vm2, %v1353_v25, %v1275_v15 }
 0x36a   :  { %v1211_v31 = vpop.permute.xlu1 %1210 }
 0x36b   :  { %v1345_v55 = vsel %vm1341_vm9, %v1336_v32, %v1211_v31 }
 0x36f   :  { %v1215_v12 = vpop.permute.xlu2 %1214  ;;  %v1151_v50 = vpop.permute.xlu0 %1150 }
 0x372   :  { %v1307_v17 = vpop.permute.xlu1 %1306 }
 0x373   :  { %v1369_v28 = vsel %vm1341_vm9, %v1361_v13, %v1307_v17 }
 0x374   :  { %v1393_v1 = vrot.slane %v1369_v28, 7 }
 0x376   :  { %v1402_v56 = vsel %vm1398_vm10, %v1345_v55, %v1393_v1 }
 0x377   :  { %v1311_v45 = vpop.permute.xlu2 %1310  ;;  %1422 = vst.msk [vmem:[#allocation10 + $0x6] sm:$0x3] %vm3112_vm14, %v1402_v56  ;;  %v1213_v24 = vpop.permute.xlu0 %1212 }
 0x37a   :  { %v1149_v37 = vpop.permute.xlu1 %1148 }
 0x37b   :  { %v1328_v2 = vsel %vm110_vm0, %v2963_v22, %v1149_v37  ;;  %v1329_v22 = vsel %vm110_vm0, %v2937_v46, %v1151_v50 }
 0x37c   :  { %v1337_v48 = vsel %vm1332_vm2, %v1328_v2, %v1181_v27 }
 0x37d   :  { %v1346_v47 = vsel %vm1341_vm9, %v1337_v48, %v1213_v24 }
 0x37f   :  { %v1153_v62 = vpop.permute.xlu2 %1152  ;;  %v1247_v61 = vpop.permute.xlu0 %1246 }
 0x380   :  { %v1330_v60 = vsel %vm110_vm0, %v3026_v36, %v1153_v62 }
 0x382   :  { %v1183_v0 = vpop.permute.xlu1 %1182 }
 0x383   :  { %v1338_v23 = vsel %vm1332_vm2, %v1329_v22, %v1183_v0 }
 0x384   :  { %v1347_v9 = vsel %vm1341_vm9, %v1338_v23, %v1215_v12 }
 0x387   :  { %v1249_v18 = vpop.permute.xlu2 %1248  ;;  %v1309_v63 = vpop.permute.xlu0 %1308 }
 0x388   :  { %v1356_v35 = vsel %vm110_vm0, %v3044_v11, %v1249_v18 }
 0x38a   :  { %v1245_v3 = vpop.permute.xlu1 %1244 }
 0x38b   :  { %v1354_v59 = vsel %vm110_vm0, %v2998_v54, %v1245_v3  ;;  %v1355_v54 = vsel %vm110_vm0, %v2973_v30, %v1247_v61 }
 0x38c   :  { %v1362_v21 = vsel %vm1332_vm2, %v1354_v59, %v1277_v43 }
 0x38d   :  { %v1370_v52 = vsel %vm1341_vm9, %v1362_v21, %v1309_v63 }
 0x38e   :  { %v1394_v57 = vrot.slane %v1370_v52, 7 }
 0x38f   :  { %v1187_v34 = vpop.permute.xlu2 %1186  ;;  %v1185_v40 = vpop.permute.xlu0 %1184 }
 0x390   :  { %v1403_v16 = vsel %vm1398_vm10, %v1346_v47, %v1394_v57  ;;  %v1339_v8 = vsel %vm1332_vm2, %v1330_v60, %v1185_v40 }
 0x391   :  { %1423 = vst.msk [vmem:[#allocation10 + $0x8] sm:$0x3] %vm3112_vm14, %v1403_v16 }
 0x392   :  { %v1279_v7 = vpop.permute.xlu1 %1278 }
 0x393   :  { %v1363_v26 = vsel %vm1332_vm2, %v1355_v54, %v1279_v7 }
 0x394   :  { %v1371_v53 = vsel %vm1341_vm9, %v1363_v26, %v1311_v45 }
 0x395   :  { %v1395_v19 = vrot.slane %v1371_v53, 7 }
 0x397   :  { %v1283_v10 = vpop.permute.xlu2 %1282  ;;  %v1404_v6 = vsel %vm1398_vm10, %v1347_v9, %v1395_v19  ;;  %v1281_v27 = vpop.permute.xlu0 %1280 }
 0x398   :  { %1424 = vst.msk [vmem:[#allocation10 + $0xa] sm:$0x3] %vm3112_vm14, %v1404_v6  ;;  %v1364_v49 = vsel %vm1332_vm2, %v1356_v35, %v1281_v27 }
 0x39a   :  { %v1217_v46 = vpop.permute.xlu1 %1216 }
 0x39b   :  { %v1348_v43 = vsel %vm1341_vm9, %v1339_v8, %v1217_v46 }
 0x39f   :  { %v1944_v4 = vpop.permute.xlu2 %1943  ;;  %v1219_v30 = vpop.permute.xlu0 %1218 }
 0x3a0   :  { %v2014_v33 = vsel %vm2007_vm7, %v3047_v58, %v1944_v4 }
 0x3a1   :  { %2023 = vst.msk [vmem:[#allocation11 + $0x6] sm:$0x1] %vm2016_vm8, %v2014_v33 }
 0x3a2   :  { %v1313_v14 = vpop.permute.xlu1 %1312 }
 0x3a3   :  { %v1372_v38 = vsel %vm1341_vm9, %v1364_v49, %v1313_v14 }
 0x3a4   :  { %v1396_v39 = vrot.slane %v1372_v38, 7 }
 0x3a6   :  { %v1405_v58 = vsel %vm1398_vm10, %v1348_v43, %v1396_v39 }
 0x3a7   :  { %1425 = vst.msk [vmem:[#allocation10 + $0xc] sm:$0x3] %vm3112_vm14, %v1405_v58  ;;  %v1315_v42 = vpop.permute.xlu0 %1314 }
 0x3aa   :  { %v1155_v11 = vpop.permute.xlu1 %1154 }
 0x3ab   :  { %v1331_v36 = vsel %vm110_vm0, %v3071_v29, %v1155_v11 }
 0x3ac   :  { %v1340_v25 = vsel %vm1332_vm2, %v1331_v36, %v1187_v34 }
 0x3af   :  { %v1942_v15 = vpop.permute.xlu0 %1941 }
 0x3b0   :  { %v2013_v31 = vsel %vm2007_vm7, %v3014_v20, %v1942_v15 }
 0x3b1   :  { %2022 = vst.msk [vmem:[#allocation11 + $0x5] sm:$0x1] %vm2016_vm8, %v2013_v31 }
 0x3b2   :  { %v1251_v12 = vpop.permute.xlu1 %1250 }
 0x3b3   :  { %v1357_v50 = vsel %vm110_vm0, %v3086_v41, %v1251_v12  ;;  %v1349_v41 = vsel %vm1341_vm9, %v1340_v25, %v1219_v30 }
 0x3b4   :  { %v1365_v13 = vsel %vm1332_vm2, %v1357_v50, %v1283_v10 }
 0x3b5   :  { %v1373_v20 = vsel %vm1341_vm9, %v1365_v13, %v1315_v42 }
 0x3b6   :  { %v1397_v29 = vrot.slane %v1373_v20, 7 }
 0x3b8   :  { %v1406_v17 = vsel %vm1398_vm10, %v1349_v41, %v1397_v29 }
 0x3b9   :  { %1426 = vst.msk [vmem:[#allocation10 + $0xe] sm:$0x3] %vm3112_vm14, %v1406_v17 }
 0x3ba   :  { %v1946_v51 = vpop.permute.xlu1 %1945  ;;  %2037 = dma.vmem_to_hbm [thread:$0]  %s2030_s24, 256, %s2032_s22, [#allocation4], %s2314_s3, %s2314_s3, %s2322_s4  }
 0x3bb   :  { %v2015_v28 = vsel %vm2007_vm7, %v3083_v44, %v1946_v51 }
 0x3bc   :  { %2024 = vst.msk [vmem:[#allocation11 + $0x7] sm:$0x1] %vm2016_vm8, %v2015_v28 }
 0x3bd   :  { %2050 = dma.vmem_to_hbm [thread:$0]  %s2043_s29, 128, %s2045_s27, [#allocation12], %s2313_s2, %s2313_s2, %s2323_s5  }
 0x3be   :  { %2299 = dma.done.wait [#allocation4], 256  }
 0x3bf   :  { %2300 = vsyncadd [#allocation4], 4294967040 }
 0x3c0   :  { %2301 = dma.done.wait [#allocation12], 128  }
 0x3c1   :  { %2302 = vsyncadd [#allocation12], 4294967168 }
 0x3c2   :  { %2059 = vsyncpa [#allocation3], 1 }
 0x3c3   :  { %2060 = vsyncpa [#allocation6], 1 }
 0x3c4   :  { %2061 = vsyncpa [#allocation9], 1 }
 0x3c5   :  { %2062 = vsyncpa [#allocation4], 1 }
 0x3c6   :  { %2063 = vsyncpa [#allocation12], 1 }

</bundles_post_ra>
